<compile_context>
chip_gen: v7x
topology: tpu7x:2x2x1
jax: 0.10.0
libtpu: 0.0.40
codegen_flags: <defaults>
</compile_context>

<pallas_src>
import jax
import jax.numpy as jnp
from jax import lax
from jax.experimental import pallas as pl
from jax.experimental.pallas import tpu as pltpu


_VMEM_SPEC = pl.BlockSpec(memory_space=pltpu.MemorySpace.VMEM)
_COMPILER_PARAMS = pltpu.CompilerParams(vmem_limit_bytes=32 * 1024 * 1024)


# ----------------------------------------------------------------------------
# Shared fused forward+backward LSTM recurrence (runs inside a Pallas kernel).
# ----------------------------------------------------------------------------
def _bilstm_recurrence(x_ref, len_ref, wih_ref, whh_f_ref, whh_b_ref, b_ref,
                       gx_scr, out_ref=None):
    """Fused fwd+bwd masked LSTM recurrence over the whole sequence.

    x_ref:   (T, B, D_in)  bf16 time-major input
    len_ref: (B, 1)        int32 valid lengths (pack_padded emulation)
    wih_ref: (D_in, 8H)    bf16  [fwd 4H | bwd 4H] input projections
    whh_*:   (H, 4H)       bf16  recurrent weights per direction
    b_ref:   (1, 8H)       f32   combined b_ih + b_hh for both directions
    gx_scr:  (T, B, 8H)    f32   scratch holding the hoisted input projection
    out_ref: (T, B, 2H)    optional padded per-timestep outputs [fwd | bwd]
    Returns (h_fwd, h_bwd) final hidden states, f32 (B, H).
    """
    T, B, _ = x_ref.shape
    H = whh_f_ref.shape[0]

    # ---- hoisted input projection: one large, MXU-dense GEMM for both dirs ----
    x_flat = x_ref[...].reshape(T * B, x_ref.shape[2])
    gx = jnp.dot(x_flat, wih_ref[...], preferred_element_type=jnp.float32)
    gx_scr[...] = (gx + b_ref[...]).reshape(T, B, 8 * H)

    # Recurrent weights / lengths loaded once, outside the time loop.
    whh_f = whh_f_ref[...]
    whh_b = whh_b_ref[...]
    lengths = len_ref[...]                                   # (B, 1) int32

    def gates_to_hc(g, c):
        # PyTorch gate order: i, f, g, o ; gate math kept in f32.
        i_g = jax.nn.sigmoid(g[:, 0 * H:1 * H])
        f_g = jax.nn.sigmoid(g[:, 1 * H:2 * H])
        g_g = jnp.tanh(g[:, 2 * H:3 * H])
        o_g = jax.nn.sigmoid(g[:, 3 * H:4 * H])
        c_new = f_g * c + i_g * g_g
        h_new = o_g * jnp.tanh(c_new)
        return h_new, c_new

    def step(s, carry):
        h_f, c_f, h_b, c_b = carry
        t_f = s                       # forward walks t = 0 .. T-1
        t_b = (T - 1) - s             # backward walks t = T-1 .. 0

        # Forward direction at t_f: only the recurrent matmul is per-step.
        g_f = gx_scr[t_f, :, :4 * H] + jnp.dot(
            h_f.astype(whh_f.dtype), whh_f, preferred_element_type=jnp.float32)
        h_f_new, c_f_new = gates_to_hc(g_f, c_f)
        m_f = lengths > t_f           # pack_padded: no state update past length
        h_f = jnp.where(m_f, h_f_new, h_f)
        c_f = jnp.where(m_f, c_f_new, c_f)

        # Backward direction at t_b.
        g_b = gx_scr[t_b, :, 4 * H:] + jnp.dot(
            h_b.astype(whh_b.dtype), whh_b, preferred_element_type=jnp.float32)
        h_b_new, c_b_new = gates_to_hc(g_b, c_b)
        m_b = lengths > t_b
        h_b = jnp.where(m_b, h_b_new, h_b)
        c_b = jnp.where(m_b, c_b_new, c_b)

        if out_ref is not None:
            # Padded (t >= length) positions are zero, like pad_packed_sequence.
            out_ref[t_f, :, :H] = jnp.where(m_f, h_f, 0.0).astype(out_ref.dtype)
            out_ref[t_b, :, H:] = jnp.where(m_b, h_b, 0.0).astype(out_ref.dtype)
        return h_f, c_f, h_b, c_b

    z = jnp.zeros((B, H), jnp.float32)
    h_f, _, h_b, _ = lax.fori_loop(0, T, step, (z, z, z, z),
                                   unroll=True if T <= 16 else 4)
    return h_f, h_b


# ----------------------------------------------------------------------------
# Pallas kernels: middle layer (emits padded sequence) and last layer (emits
# sigmoid(FC(cat(h_fwd, h_bwd)))).
# ----------------------------------------------------------------------------
def _bilstm_mid_kernel(x_ref, len_ref, wih_ref, whh_f_ref, whh_b_ref, b_ref,
                       out_ref, gx_scr):
    _bilstm_recurrence(x_ref, len_ref, wih_ref, whh_f_ref, whh_b_ref, b_ref,
                       gx_scr, out_ref)


def _bilstm_last_kernel(x_ref, len_ref, wih_ref, whh_f_ref, whh_b_ref, b_ref,
                        fcw_ref, fcb_ref, probs_ref, gx_scr):
    h_f, h_b = _bilstm_recurrence(x_ref, len_ref, wih_ref, whh_f_ref, whh_b_ref,
                                  b_ref, gx_scr)
    # hidden = cat(hidden[-2], hidden[-1]) -> Linear -> Sigmoid, fused here while
    # the final states are still resident on-chip.
    hid = jnp.concatenate([h_f, h_b], axis=1)                     # (B, 2H) f32
    logits = jnp.dot(hid.astype(fcw_ref.dtype), fcw_ref[...],
                     preferred_element_type=jnp.float32) + fcb_ref[...]
    probs_ref[...] = jax.nn.sigmoid(logits)


def _run_bilstm_mid(x, lengths_b1, w_ih, w_hh_f, w_hh_b, b):
    T, B, _ = x.shape
    H = w_hh_f.shape[0]
    return pl.pallas_call(
        _bilstm_mid_kernel,
        out_shape=jax.ShapeDtypeStruct((T, B, 2 * H), x.dtype),
        in_specs=[_VMEM_SPEC] * 6,
        out_specs=_VMEM_SPEC,
        scratch_shapes=[pltpu.VMEM((T, B, 8 * H), jnp.float32)],
        compiler_params=_COMPILER_PARAMS,
    )(x, lengths_b1, w_ih, w_hh_f, w_hh_b, b)


def _run_bilstm_last(x, lengths_b1, w_ih, w_hh_f, w_hh_b, b, fc_w_t, fc_b):
    T, B, _ = x.shape
    H = w_hh_f.shape[0]
    C = fc_w_t.shape[1]
    return pl.pallas_call(
        _bilstm_last_kernel,
        out_shape=jax.ShapeDtypeStruct((B, C), jnp.float32),
        in_specs=[_VMEM_SPEC] * 8,
        out_specs=_VMEM_SPEC,
        scratch_shapes=[pltpu.VMEM((T, B, 8 * H), jnp.float32)],
        compiler_params=_COMPILER_PARAMS,
    )(x, lengths_b1, w_ih, w_hh_f, w_hh_b, b, fc_w_t, fc_b)


# ----------------------------------------------------------------------------
# Full SeqClassifier forward.
# ----------------------------------------------------------------------------
def seq_classifier_forward(params, batch_ids, lengths):
    """batch_ids: (B, T) int32 token ids; lengths: (B,) int32, sorted descending, >= 1."""
    B = batch_ids.shape[0]
    # Embedding gather directly in time-major (T, B, E) order; bf16 MXU inputs.
    x = params["embeddings"][batch_ids.T].astype(jnp.bfloat16)
    lengths = lengths.astype(jnp.int32)

    # Pad the batch to a full f32 sublane multiple (8); padded rows get length 0,
    # so their state never updates, and they are sliced off at the end.
    b_pad = (-B) % 8
    if b_pad:
        x = jnp.pad(x, ((0, 0), (0, b_pad), (0, 0)))
        lengths = jnp.pad(lengths, (0, b_pad))
    lengths_b1 = lengths[:, None]

    n_layers = len(params["lstm"])
    probs = None
    for li, layer in enumerate(params["lstm"]):
        # TODO(synk): inter-layer dropout (training-only) is not applied.
        if li == n_layers - 1:
            probs = _run_bilstm_last(
                x, lengths_b1, layer["w_ih"], layer["w_hh_f"], layer["w_hh_b"],
                layer["b"], params["fc_w_t"], params["fc_b"])
        else:
            x = _run_bilstm_mid(
                x, lengths_b1, layer["w_ih"], layer["w_hh_f"], layer["w_hh_b"],
                layer["b"])
    return probs[:B]


# ----------------------------------------------------------------------------
# Deterministic parameter initialization (shapes per SeqClassifier.__init__).
# ----------------------------------------------------------------------------
def init_params(key, vocab_size, embed_dim, hidden_size, num_layers, num_class):
    keys = iter(jax.random.split(key, 4 + num_layers * 12))
    scale = 1.0 / jnp.sqrt(jnp.float32(hidden_size))

    def u(shape):
        return jax.random.uniform(next(keys), shape, jnp.float32, -scale, scale)

    params = {"embeddings": jax.random.normal(next(keys),
                                              (vocab_size, embed_dim), jnp.float32)}
    lstm = []
    for layer in range(num_layers):
        d_in = embed_dim if layer == 0 else 2 * hidden_size
        # Stored transposed vs PyTorch: (D_in, 4H) / (H, 4H); gate order i,f,g,o.
        wih_f = u((d_in, 4 * hidden_size))
        wih_b = u((d_in, 4 * hidden_size))
        whh_f = u((hidden_size, 4 * hidden_size))
        whh_b = u((hidden_size, 4 * hidden_size))
        b_f = u((1, 4 * hidden_size)) + u((1, 4 * hidden_size))   # b_ih + b_hh
        b_b = u((1, 4 * hidden_size)) + u((1, 4 * hidden_size))
        lstm.append({
            # fwd/bwd input projections stacked along the output (lane) dim so the
            # hoisted gates_x GEMM serves both directions at once; weights bf16
            # for the MXU, biases kept f32 (added to the f32 accumulator).
            "w_ih": jnp.concatenate([wih_f, wih_b], axis=1).astype(jnp.bfloat16),
            "w_hh_f": whh_f.astype(jnp.bfloat16),
            "w_hh_b": whh_b.astype(jnp.bfloat16),
            "b": jnp.concatenate([b_f, b_b], axis=1),
        })
    params["lstm"] = lstm
    params["fc_w_t"] = u((2 * hidden_size, num_class)).astype(jnp.bfloat16)
    params["fc_b"] = u((1, num_class))
    return params


if __name__ == "__main__":
    B, T = 2, 8
    VOCAB, EMBED_DIM = 50, 16
    HIDDEN, NUM_LAYERS, NUM_CLASS = 32, 2, 10

    key = jax.random.PRNGKey(0)
    k_param, k_ids = jax.random.split(key)
    params = init_params(k_param, VOCAB, EMBED_DIM, HIDDEN, NUM_LAYERS, NUM_CLASS)

    batch_ids = jax.random.randint(k_ids, (B, T), 0, VOCAB, dtype=jnp.int32)
    lengths = jnp.array([8, 5], dtype=jnp.int32)   # sorted descending (pack_padded)

    out = seq_classifier_forward(params, batch_ids, lengths)
    jax.block_until_ready(out)
    assert out.shape == (B, NUM_CLASS)
    print("KERNEL_OK")
</pallas_src>

<mosaic_0001>
module attributes {stable_mosaic.version = 11 : i64} {
  func.func @_bilstm_mid_kernel(%arg0: memref<8x8x16xbf16, #tpu.memory_space<vmem>>, %arg1: memref<8x1xi32, #tpu.memory_space<vmem>>, %arg2: memref<16x256xbf16, #tpu.memory_space<vmem>>, %arg3: memref<32x128xbf16, #tpu.memory_space<vmem>>, %arg4: memref<32x128xbf16, #tpu.memory_space<vmem>>, %arg5: memref<1x256xf32, #tpu.memory_space<vmem>>, %arg6: memref<8x8x64xbf16, #tpu.memory_space<vmem>>, %arg7: memref<8x8x256xf32, #tpu.memory_space<vmem>>) attributes {dimension_semantics = [], scalar_prefetch = 0 : i64, scratch_operands = 1 : i64, tpu.core_type = #tpu.core_type<tc>} {
    %c0 = arith.constant 0 : index
    %c0_0 = arith.constant 0 : index
    %c0_1 = arith.constant 0 : index
    %0 = vector.load %arg0[%c0, %c0_0, %c0_1] : memref<8x8x16xbf16, #tpu.memory_space<vmem>>, vector<8x8x16xbf16>
    %1 = vector.shape_cast %0 : vector<8x8x16xbf16> to vector<64x16xbf16>
    %c0_2 = arith.constant 0 : index
    %c0_3 = arith.constant 0 : index
    %2 = vector.load %arg2[%c0_2, %c0_3] : memref<16x256xbf16, #tpu.memory_space<vmem>>, vector<16x256xbf16>
    %cst = arith.constant dense<0.000000e+00> : vector<64x256xf32>
    %3 = tpu.matmul %1, %2, %cst {dimension_numbers = #tpu.dot_dimension_numbers<[1], [0], [0], [1], [0, 0, 1, 1], [], []>} : vector<64x16xbf16>, vector<16x256xbf16>, vector<64x256xf32> -> vector<64x256xf32>
    %c0_4 = arith.constant 0 : index
    %c0_5 = arith.constant 0 : index
    %4 = vector.load %arg5[%c0_4, %c0_5] : memref<1x256xf32, #tpu.memory_space<vmem>>, vector<1x256xf32>
    %5 = vector.broadcast %4 : vector<1x256xf32> to vector<64x256xf32>
    %6 = arith.addf %3, %5 : vector<64x256xf32>
    %7 = vector.shape_cast %6 : vector<64x256xf32> to vector<8x8x256xf32>
    %c0_6 = arith.constant 0 : index
    %c0_7 = arith.constant 0 : index
    %c0_8 = arith.constant 0 : index
    %8 = vector.load %arg7[%c0_6, %c0_7, %c0_8] : memref<8x8x256xf32, #tpu.memory_space<vmem>>, vector<8x8x256xf32>
    tpu.vector_store %arg7[%c0_6, %c0_7, %c0_8], %7 {strides = array<i32>} : memref<8x8x256xf32, #tpu.memory_space<vmem>>, vector<8x8x256xf32>,
    %c0_9 = arith.constant 0 : index
    %c0_10 = arith.constant 0 : index
    %9 = vector.load %arg3[%c0_9, %c0_10] : memref<32x128xbf16, #tpu.memory_space<vmem>>, vector<32x128xbf16>
    %c0_11 = arith.constant 0 : index
    %c0_12 = arith.constant 0 : index
    %10 = vector.load %arg4[%c0_11, %c0_12] : memref<32x128xbf16, #tpu.memory_space<vmem>>, vector<32x128xbf16>
    %c0_13 = arith.constant 0 : index
    %c0_14 = arith.constant 0 : index
    %11 = vector.load %arg1[%c0_13, %c0_14] : memref<8x1xi32, #tpu.memory_space<vmem>>, vector<8x1xi32>
    %cst_15 = arith.constant 0.000000e+00 : f32
    %12 = vector.broadcast %cst_15 : f32 to vector<8x32xf32>
    %c0_i32 = arith.constant 0 : i32
    %c7_i32 = arith.constant 7 : i32
    %13 = arith.subi %c7_i32, %c0_i32 : i32
    %14 = arith.index_cast %c0_i32 : i32 to index
    %c0_16 = arith.constant 0 : index
    %c0_17 = arith.constant 0 : index
    %15 = vector.load %arg7[%14, %c0_16, %c0_17] : memref<8x8x256xf32, #tpu.memory_space<vmem>>, vector<1x8x128xf32>
    %16 = vector.shape_cast %15 : vector<1x8x128xf32> to vector<8x128xf32>
    %17 = arith.truncf %12 : vector<8x32xf32> to vector<8x32xbf16>
    %cst_18 = arith.constant dense<0.000000e+00> : vector<8x128xf32>
    %18 = tpu.matmul %17, %9, %cst_18 {dimension_numbers = #tpu.dot_dimension_numbers<[1], [0], [0], [1], [0, 0, 1, 1], [], []>} : vector<8x32xbf16>, vector<32x128xbf16>, vector<8x128xf32> -> vector<8x128xf32>
    %19 = arith.addf %16, %18 : vector<8x128xf32>
    %20 = vector.extract_strided_slice %19 {offsets = [0, 0], sizes = [8, 32], strides = [1, 1]} : vector<8x128xf32> to vector<8x32xf32>
    %21 = arith.negf %20 : vector<8x32xf32>
    %22 = math.exp %21 : vector<8x32xf32>
    %cst_19 = arith.constant 1.000000e+00 : f32
    %23 = vector.broadcast %cst_19 : f32 to vector<8x32xf32>
    %24 = arith.addf %23, %22 : vector<8x32xf32>
    %25 = arith.divf %23, %24 : vector<8x32xf32>
    %26 = vector.extract_strided_slice %19 {offsets = [0, 32], sizes = [8, 32], strides = [1, 1]} : vector<8x128xf32> to vector<8x32xf32>
    %27 = arith.negf %26 : vector<8x32xf32>
    %28 = math.exp %27 : vector<8x32xf32>
    %cst_20 = arith.constant 1.000000e+00 : f32
    %29 = vector.broadcast %cst_20 : f32 to vector<8x32xf32>
    %30 = arith.addf %29, %28 : vector<8x32xf32>
    %31 = arith.divf %29, %30 : vector<8x32xf32>
    %32 = vector.extract_strided_slice %19 {offsets = [0, 64], sizes = [8, 32], strides = [1, 1]} : vector<8x128xf32> to vector<8x32xf32>
    %33 = math.tanh %32 : vector<8x32xf32>
    %34 = vector.extract_strided_slice %19 {offsets = [0, 96], sizes = [8, 32], strides = [1, 1]} : vector<8x128xf32> to vector<8x32xf32>
    %35 = arith.negf %34 : vector<8x32xf32>
    %36 = math.exp %35 : vector<8x32xf32>
    %cst_21 = arith.constant 1.000000e+00 : f32
    %37 = vector.broadcast %cst_21 : f32 to vector<8x32xf32>
    %38 = arith.addf %37, %36 : vector<8x32xf32>
    %39 = arith.divf %37, %38 : vector<8x32xf32>
    %40 = arith.mulf %31, %12 : vector<8x32xf32>
    %41 = arith.mulf %25, %33 : vector<8x32xf32>
    %42 = arith.addf %40, %41 : vector<8x32xf32>
    %43 = math.tanh %42 : vector<8x32xf32>
    %44 = arith.mulf %39, %43 : vector<8x32xf32>
    %45 = vector.broadcast %c0_i32 : i32 to vector<8x1xi32>
    %46 = arith.cmpi sgt, %11, %45 : vector<8x1xi32>
    %47 = vector.shape_cast %46 : vector<8x1xi1> to vector<8x1xi1>
    %48 = vector.broadcast %47 : vector<8x1xi1> to vector<8x32xi1>
    %49 = arith.select %48, %44, %12 : vector<8x32xi1>, vector<8x32xf32>
    %50 = vector.shape_cast %46 : vector<8x1xi1> to vector<8x1xi1>
    %51 = vector.broadcast %50 : vector<8x1xi1> to vector<8x32xi1>
    %52 = arith.select %51, %42, %12 : vector<8x32xi1>, vector<8x32xf32>
    %53 = arith.index_cast %13 : i32 to index
    %c0_22 = arith.constant 0 : index
    %c128 = arith.constant 128 : index
    %54 = vector.load %arg7[%53, %c0_22, %c128] : memref<8x8x256xf32, #tpu.memory_space<vmem>>, vector<1x8x128xf32>
    %55 = vector.shape_cast %54 : vector<1x8x128xf32> to vector<8x128xf32>
    %56 = arith.truncf %12 : vector<8x32xf32> to vector<8x32xbf16>
    %cst_23 = arith.constant dense<0.000000e+00> : vector<8x128xf32>
    %57 = tpu.matmul %56, %10, %cst_23 {dimension_numbers = #tpu.dot_dimension_numbers<[1], [0], [0], [1], [0, 0, 1, 1], [], []>} : vector<8x32xbf16>, vector<32x128xbf16>, vector<8x128xf32> -> vector<8x128xf32>
    %58 = arith.addf %55, %57 : vector<8x128xf32>
    %59 = vector.extract_strided_slice %58 {offsets = [0, 0], sizes = [8, 32], strides = [1, 1]} : vector<8x128xf32> to vector<8x32xf32>
    %60 = arith.negf %59 : vector<8x32xf32>
    %61 = math.exp %60 : vector<8x32xf32>
    %cst_24 = arith.constant 1.000000e+00 : f32
    %62 = vector.broadcast %cst_24 : f32 to vector<8x32xf32>
    %63 = arith.addf %62, %61 : vector<8x32xf32>
    %64 = arith.divf %62, %63 : vector<8x32xf32>
    %65 = vector.extract_strided_slice %58 {offsets = [0, 32], sizes = [8, 32], strides = [1, 1]} : vector<8x128xf32> to vector<8x32xf32>
    %66 = arith.negf %65 : vector<8x32xf32>
    %67 = math.exp %66 : vector<8x32xf32>
    %cst_25 = arith.constant 1.000000e+00 : f32
    %68 = vector.broadcast %cst_25 : f32 to vector<8x32xf32>
    %69 = arith.addf %68, %67 : vector<8x32xf32>
    %70 = arith.divf %68, %69 : vector<8x32xf32>
    %71 = vector.extract_strided_slice %58 {offsets = [0, 64], sizes = [8, 32], strides = [1, 1]} : vector<8x128xf32> to vector<8x32xf32>
    %72 = math.tanh %71 : vector<8x32xf32>
    %73 = vector.extract_strided_slice %58 {offsets = [0, 96], sizes = [8, 32], strides = [1, 1]} : vector<8x128xf32> to vector<8x32xf32>
    %74 = arith.negf %73 : vector<8x32xf32>
    %75 = math.exp %74 : vector<8x32xf32>
    %cst_26 = arith.constant 1.000000e+00 : f32
    %76 = vector.broadcast %cst_26 : f32 to vector<8x32xf32>
    %77 = arith.addf %76, %75 : vector<8x32xf32>
    %78 = arith.divf %76, %77 : vector<8x32xf32>
    %79 = arith.mulf %70, %12 : vector<8x32xf32>
    %80 = arith.mulf %64, %72 : vector<8x32xf32>
    %81 = arith.addf %79, %80 : vector<8x32xf32>
    %82 = math.tanh %81 : vector<8x32xf32>
    %83 = arith.mulf %78, %82 : vector<8x32xf32>
    %84 = vector.broadcast %13 : i32 to vector<8x1xi32>
    %85 = arith.cmpi sgt, %11, %84 : vector<8x1xi32>
    %86 = vector.shape_cast %85 : vector<8x1xi1> to vector<8x1xi1>
    %87 = vector.broadcast %86 : vector<8x1xi1> to vector<8x32xi1>
    %88 = arith.select %87, %83, %12 : vector<8x32xi1>, vector<8x32xf32>
    %89 = vector.shape_cast %85 : vector<8x1xi1> to vector<8x1xi1>
    %90 = vector.broadcast %89 : vector<8x1xi1> to vector<8x32xi1>
    %91 = arith.select %90, %81, %12 : vector<8x32xi1>, vector<8x32xf32>
    %cst_27 = arith.constant 0.000000e+00 : f32
    %92 = vector.shape_cast %46 : vector<8x1xi1> to vector<8x1xi1>
    %93 = vector.broadcast %92 : vector<8x1xi1> to vector<8x32xi1>
    %94 = vector.broadcast %cst_27 : f32 to vector<8x32xf32>
    %95 = arith.select %93, %49, %94 : vector<8x32xi1>, vector<8x32xf32>
    %96 = arith.truncf %95 : vector<8x32xf32> to vector<8x32xbf16>
    %97 = arith.index_cast %c0_i32 : i32 to index
    %c0_28 = arith.constant 0 : index
    %c0_29 = arith.constant 0 : index
    %98 = vector.load %arg6[%97, %c0_28, %c0_29] : memref<8x8x64xbf16, #tpu.memory_space<vmem>>, vector<1x8x32xbf16>
    %99 = vector.shape_cast %98 : vector<1x8x32xbf16> to vector<8x32xbf16>
    %100 = vector.shape_cast %96 : vector<8x32xbf16> to vector<1x8x32xbf16>
    tpu.vector_store %arg6[%97, %c0_28, %c0_29], %100 {strides = array<i32>} : memref<8x8x64xbf16, #tpu.memory_space<vmem>>, vector<1x8x32xbf16>,
    %cst_30 = arith.constant 0.000000e+00 : f32
    %101 = vector.shape_cast %85 : vector<8x1xi1> to vector<8x1xi1>
    %102 = vector.broadcast %101 : vector<8x1xi1> to vector<8x32xi1>
    %103 = vector.broadcast %cst_30 : f32 to vector<8x32xf32>
    %104 = arith.select %102, %88, %103 : vector<8x32xi1>, vector<8x32xf32>
    %105 = arith.truncf %104 : vector<8x32xf32> to vector<8x32xbf16>
    %106 = arith.index_cast %13 : i32 to index
    %c0_31 = arith.constant 0 : index
    %c32 = arith.constant 32 : index
    %107 = vector.load %arg6[%106, %c0_31, %c32] : memref<8x8x64xbf16, #tpu.memory_space<vmem>>, vector<1x8x32xbf16>
    %108 = vector.shape_cast %107 : vector<1x8x32xbf16> to vector<8x32xbf16>
    %109 = vector.shape_cast %105 : vector<8x32xbf16> to vector<1x8x32xbf16>
    tpu.vector_store %arg6[%106, %c0_31, %c32], %109 {strides = array<i32>} : memref<8x8x64xbf16, #tpu.memory_space<vmem>>, vector<1x8x32xbf16>,
    %c1_i32 = arith.constant 1 : i32
    %c7_i32_32 = arith.constant 7 : i32
    %110 = arith.subi %c7_i32_32, %c1_i32 : i32
    %111 = arith.index_cast %c1_i32 : i32 to index
    %c0_33 = arith.constant 0 : index
    %c0_34 = arith.constant 0 : index
    %112 = vector.load %arg7[%111, %c0_33, %c0_34] : memref<8x8x256xf32, #tpu.memory_space<vmem>>, vector<1x8x128xf32>
    %113 = vector.shape_cast %112 : vector<1x8x128xf32> to vector<8x128xf32>
    %114 = arith.truncf %49 : vector<8x32xf32> to vector<8x32xbf16>
    %cst_35 = arith.constant dense<0.000000e+00> : vector<8x128xf32>
    %115 = tpu.matmul %114, %9, %cst_35 {dimension_numbers = #tpu.dot_dimension_numbers<[1], [0], [0], [1], [0, 0, 1, 1], [], []>} : vector<8x32xbf16>, vector<32x128xbf16>, vector<8x128xf32> -> vector<8x128xf32>
    %116 = arith.addf %113, %115 : vector<8x128xf32>
    %117 = vector.extract_strided_slice %116 {offsets = [0, 0], sizes = [8, 32], strides = [1, 1]} : vector<8x128xf32> to vector<8x32xf32>
    %118 = arith.negf %117 : vector<8x32xf32>
    %119 = math.exp %118 : vector<8x32xf32>
    %cst_36 = arith.constant 1.000000e+00 : f32
    %120 = vector.broadcast %cst_36 : f32 to vector<8x32xf32>
    %121 = arith.addf %120, %119 : vector<8x32xf32>
    %122 = arith.divf %120, %121 : vector<8x32xf32>
    %123 = vector.extract_strided_slice %116 {offsets = [0, 32], sizes = [8, 32], strides = [1, 1]} : vector<8x128xf32> to vector<8x32xf32>
    %124 = arith.negf %123 : vector<8x32xf32>
    %125 = math.exp %124 : vector<8x32xf32>
    %cst_37 = arith.constant 1.000000e+00 : f32
    %126 = vector.broadcast %cst_37 : f32 to vector<8x32xf32>
    %127 = arith.addf %126, %125 : vector<8x32xf32>
    %128 = arith.divf %126, %127 : vector<8x32xf32>
    %129 = vector.extract_strided_slice %116 {offsets = [0, 64], sizes = [8, 32], strides = [1, 1]} : vector<8x128xf32> to vector<8x32xf32>
    %130 = math.tanh %129 : vector<8x32xf32>
    %131 = vector.extract_strided_slice %116 {offsets = [0, 96], sizes = [8, 32], strides = [1, 1]} : vector<8x128xf32> to vector<8x32xf32>
    %132 = arith.negf %131 : vector<8x32xf32>
    %133 = math.exp %132 : vector<8x32xf32>
    %cst_38 = arith.constant 1.000000e+00 : f32
    %134 = vector.broadcast %cst_38 : f32 to vector<8x32xf32>
    %135 = arith.addf %134, %133 : vector<8x32xf32>
    %136 = arith.divf %134, %135 : vector<8x32xf32>
    %137 = arith.mulf %128, %52 : vector<8x32xf32>
    %138 = arith.mulf %122, %130 : vector<8x32xf32>
    %139 = arith.addf %137, %138 : vector<8x32xf32>
    %140 = math.tanh %139 : vector<8x32xf32>
    %141 = arith.mulf %136, %140 : vector<8x32xf32>
    %142 = vector.broadcast %c1_i32 : i32 to vector<8x1xi32>
    %143 = arith.cmpi sgt, %11, %142 : vector<8x1xi32>
    %144 = vector.shape_cast %143 : vector<8x1xi1> to vector<8x1xi1>
    %145 = vector.broadcast %144 : vector<8x1xi1> to vector<8x32xi1>
    %146 = arith.select %145, %141, %49 : vector<8x32xi1>, vector<8x32xf32>
    %147 = vector.shape_cast %143 : vector<8x1xi1> to vector<8x1xi1>
    %148 = vector.broadcast %147 : vector<8x1xi1> to vector<8x32xi1>
    %149 = arith.select %148, %139, %52 : vector<8x32xi1>, vector<8x32xf32>
    %150 = arith.index_cast %110 : i32 to index
    %c0_39 = arith.constant 0 : index
    %c128_40 = arith.constant 128 : index
    %151 = vector.load %arg7[%150, %c0_39, %c128_40] : memref<8x8x256xf32, #tpu.memory_space<vmem>>, vector<1x8x128xf32>
    %152 = vector.shape_cast %151 : vector<1x8x128xf32> to vector<8x128xf32>
    %153 = arith.truncf %88 : vector<8x32xf32> to vector<8x32xbf16>
    %cst_41 = arith.constant dense<0.000000e+00> : vector<8x128xf32>
    %154 = tpu.matmul %153, %10, %cst_41 {dimension_numbers = #tpu.dot_dimension_numbers<[1], [0], [0], [1], [0, 0, 1, 1], [], []>} : vector<8x32xbf16>, vector<32x128xbf16>, vector<8x128xf32> -> vector<8x128xf32>
    %155 = arith.addf %152, %154 : vector<8x128xf32>
    %156 = vector.extract_strided_slice %155 {offsets = [0, 0], sizes = [8, 32], strides = [1, 1]} : vector<8x128xf32> to vector<8x32xf32>
    %157 = arith.negf %156 : vector<8x32xf32>
    %158 = math.exp %157 : vector<8x32xf32>
    %cst_42 = arith.constant 1.000000e+00 : f32
    %159 = vector.broadcast %cst_42 : f32 to vector<8x32xf32>
    %160 = arith.addf %159, %158 : vector<8x32xf32>
    %161 = arith.divf %159, %160 : vector<8x32xf32>
    %162 = vector.extract_strided_slice %155 {offsets = [0, 32], sizes = [8, 32], strides = [1, 1]} : vector<8x128xf32> to vector<8x32xf32>
    %163 = arith.negf %162 : vector<8x32xf32>
    %164 = math.exp %163 : vector<8x32xf32>
    %cst_43 = arith.constant 1.000000e+00 : f32
    %165 = vector.broadcast %cst_43 : f32 to vector<8x32xf32>
    %166 = arith.addf %165, %164 : vector<8x32xf32>
    %167 = arith.divf %165, %166 : vector<8x32xf32>
    %168 = vector.extract_strided_slice %155 {offsets = [0, 64], sizes = [8, 32], strides = [1, 1]} : vector<8x128xf32> to vector<8x32xf32>
    %169 = math.tanh %168 : vector<8x32xf32>
    %170 = vector.extract_strided_slice %155 {offsets = [0, 96], sizes = [8, 32], strides = [1, 1]} : vector<8x128xf32> to vector<8x32xf32>
    %171 = arith.negf %170 : vector<8x32xf32>
    %172 = math.exp %171 : vector<8x32xf32>
    %cst_44 = arith.constant 1.000000e+00 : f32
    %173 = vector.broadcast %cst_44 : f32 to vector<8x32xf32>
    %174 = arith.addf %173, %172 : vector<8x32xf32>
    %175 = arith.divf %173, %174 : vector<8x32xf32>
    %176 = arith.mulf %167, %91 : vector<8x32xf32>
    %177 = arith.mulf %161, %169 : vector<8x32xf32>
    %178 = arith.addf %176, %177 : vector<8x32xf32>
    %179 = math.tanh %178 : vector<8x32xf32>
    %180 = arith.mulf %175, %179 : vector<8x32xf32>
    %181 = vector.broadcast %110 : i32 to vector<8x1xi32>
    %182 = arith.cmpi sgt, %11, %181 : vector<8x1xi32>
    %183 = vector.shape_cast %182 : vector<8x1xi1> to vector<8x1xi1>
    %184 = vector.broadcast %183 : vector<8x1xi1> to vector<8x32xi1>
    %185 = arith.select %184, %180, %88 : vector<8x32xi1>, vector<8x32xf32>
    %186 = vector.shape_cast %182 : vector<8x1xi1> to vector<8x1xi1>
    %187 = vector.broadcast %186 : vector<8x1xi1> to vector<8x32xi1>
    %188 = arith.select %187, %178, %91 : vector<8x32xi1>, vector<8x32xf32>
    %cst_45 = arith.constant 0.000000e+00 : f32
    %189 = vector.shape_cast %143 : vector<8x1xi1> to vector<8x1xi1>
    %190 = vector.broadcast %189 : vector<8x1xi1> to vector<8x32xi1>
    %191 = vector.broadcast %cst_45 : f32 to vector<8x32xf32>
    %192 = arith.select %190, %146, %191 : vector<8x32xi1>, vector<8x32xf32>
    %193 = arith.truncf %192 : vector<8x32xf32> to vector<8x32xbf16>
    %194 = arith.index_cast %c1_i32 : i32 to index
    %c0_46 = arith.constant 0 : index
    %c0_47 = arith.constant 0 : index
    %195 = vector.load %arg6[%194, %c0_46, %c0_47] : memref<8x8x64xbf16, #tpu.memory_space<vmem>>, vector<1x8x32xbf16>
    %196 = vector.shape_cast %195 : vector<1x8x32xbf16> to vector<8x32xbf16>
    %197 = vector.shape_cast %193 : vector<8x32xbf16> to vector<1x8x32xbf16>
    tpu.vector_store %arg6[%194, %c0_46, %c0_47], %197 {strides = array<i32>} : memref<8x8x64xbf16, #tpu.memory_space<vmem>>, vector<1x8x32xbf16>,
    %cst_48 = arith.constant 0.000000e+00 : f32
    %198 = vector.shape_cast %182 : vector<8x1xi1> to vector<8x1xi1>
    %199 = vector.broadcast %198 : vector<8x1xi1> to vector<8x32xi1>
    %200 = vector.broadcast %cst_48 : f32 to vector<8x32xf32>
    %201 = arith.select %199, %185, %200 : vector<8x32xi1>, vector<8x32xf32>
    %202 = arith.truncf %201 : vector<8x32xf32> to vector<8x32xbf16>
    %203 = arith.index_cast %110 : i32 to index
    %c0_49 = arith.constant 0 : index
    %c32_50 = arith.constant 32 : index
    %204 = vector.load %arg6[%203, %c0_49, %c32_50] : memref<8x8x64xbf16, #tpu.memory_space<vmem>>, vector<1x8x32xbf16>
    %205 = vector.shape_cast %204 : vector<1x8x32xbf16> to vector<8x32xbf16>
    %206 = vector.shape_cast %202 : vector<8x32xbf16> to vector<1x8x32xbf16>
    tpu.vector_store %arg6[%203, %c0_49, %c32_50], %206 {strides = array<i32>} : memref<8x8x64xbf16, #tpu.memory_space<vmem>>, vector<1x8x32xbf16>,
    %c2_i32 = arith.constant 2 : i32
    %c7_i32_51 = arith.constant 7 : i32
    %207 = arith.subi %c7_i32_51, %c2_i32 : i32
    %208 = arith.index_cast %c2_i32 : i32 to index
    %c0_52 = arith.constant 0 : index
    %c0_53 = arith.constant 0 : index
    %209 = vector.load %arg7[%208, %c0_52, %c0_53] : memref<8x8x256xf32, #tpu.memory_space<vmem>>, vector<1x8x128xf32>
    %210 = vector.shape_cast %209 : vector<1x8x128xf32> to vector<8x128xf32>
    %211 = arith.truncf %146 : vector<8x32xf32> to vector<8x32xbf16>
    %cst_54 = arith.constant dense<0.000000e+00> : vector<8x128xf32>
    %212 = tpu.matmul %211, %9, %cst_54 {dimension_numbers = #tpu.dot_dimension_numbers<[1], [0], [0], [1], [0, 0, 1, 1], [], []>} : vector<8x32xbf16>, vector<32x128xbf16>, vector<8x128xf32> -> vector<8x128xf32>
    %213 = arith.addf %210, %212 : vector<8x128xf32>
    %214 = vector.extract_strided_slice %213 {offsets = [0, 0], sizes = [8, 32], strides = [1, 1]} : vector<8x128xf32> to vector<8x32xf32>
    %215 = arith.negf %214 : vector<8x32xf32>
    %216 = math.exp %215 : vector<8x32xf32>
    %cst_55 = arith.constant 1.000000e+00 : f32
    %217 = vector.broadcast %cst_55 : f32 to vector<8x32xf32>
    %218 = arith.addf %217, %216 : vector<8x32xf32>
    %219 = arith.divf %217, %218 : vector<8x32xf32>
    %220 = vector.extract_strided_slice %213 {offsets = [0, 32], sizes = [8, 32], strides = [1, 1]} : vector<8x128xf32> to vector<8x32xf32>
    %221 = arith.negf %220 : vector<8x32xf32>
    %222 = math.exp %221 : vector<8x32xf32>
    %cst_56 = arith.constant 1.000000e+00 : f32
    %223 = vector.broadcast %cst_56 : f32 to vector<8x32xf32>
    %224 = arith.addf %223, %222 : vector<8x32xf32>
    %225 = arith.divf %223, %224 : vector<8x32xf32>
    %226 = vector.extract_strided_slice %213 {offsets = [0, 64], sizes = [8, 32], strides = [1, 1]} : vector<8x128xf32> to vector<8x32xf32>
    %227 = math.tanh %226 : vector<8x32xf32>
    %228 = vector.extract_strided_slice %213 {offsets = [0, 96], sizes = [8, 32], strides = [1, 1]} : vector<8x128xf32> to vector<8x32xf32>
    %229 = arith.negf %228 : vector<8x32xf32>
    %230 = math.exp %229 : vector<8x32xf32>
    %cst_57 = arith.constant 1.000000e+00 : f32
    %231 = vector.broadcast %cst_57 : f32 to vector<8x32xf32>
    %232 = arith.addf %231, %230 : vector<8x32xf32>
    %233 = arith.divf %231, %232 : vector<8x32xf32>
    %234 = arith.mulf %225, %149 : vector<8x32xf32>
    %235 = arith.mulf %219, %227 : vector<8x32xf32>
    %236 = arith.addf %234, %235 : vector<8x32xf32>
    %237 = math.tanh %236 : vector<8x32xf32>
    %238 = arith.mulf %233, %237 : vector<8x32xf32>
    %239 = vector.broadcast %c2_i32 : i32 to vector<8x1xi32>
    %240 = arith.cmpi sgt, %11, %239 : vector<8x1xi32>
    %241 = vector.shape_cast %240 : vector<8x1xi1> to vector<8x1xi1>
    %242 = vector.broadcast %241 : vector<8x1xi1> to vector<8x32xi1>
    %243 = arith.select %242, %238, %146 : vector<8x32xi1>, vector<8x32xf32>
    %244 = vector.shape_cast %240 : vector<8x1xi1> to vector<8x1xi1>
    %245 = vector.broadcast %244 : vector<8x1xi1> to vector<8x32xi1>
    %246 = arith.select %245, %236, %149 : vector<8x32xi1>, vector<8x32xf32>
    %247 = arith.index_cast %207 : i32 to index
    %c0_58 = arith.constant 0 : index
    %c128_59 = arith.constant 128 : index
    %248 = vector.load %arg7[%247, %c0_58, %c128_59] : memref<8x8x256xf32, #tpu.memory_space<vmem>>, vector<1x8x128xf32>
    %249 = vector.shape_cast %248 : vector<1x8x128xf32> to vector<8x128xf32>
    %250 = arith.truncf %185 : vector<8x32xf32> to vector<8x32xbf16>
    %cst_60 = arith.constant dense<0.000000e+00> : vector<8x128xf32>
    %251 = tpu.matmul %250, %10, %cst_60 {dimension_numbers = #tpu.dot_dimension_numbers<[1], [0], [0], [1], [0, 0, 1, 1], [], []>} : vector<8x32xbf16>, vector<32x128xbf16>, vector<8x128xf32> -> vector<8x128xf32>
    %252 = arith.addf %249, %251 : vector<8x128xf32>
    %253 = vector.extract_strided_slice %252 {offsets = [0, 0], sizes = [8, 32], strides = [1, 1]} : vector<8x128xf32> to vector<8x32xf32>
    %254 = arith.negf %253 : vector<8x32xf32>
    %255 = math.exp %254 : vector<8x32xf32>
    %cst_61 = arith.constant 1.000000e+00 : f32
    %256 = vector.broadcast %cst_61 : f32 to vector<8x32xf32>
    %257 = arith.addf %256, %255 : vector<8x32xf32>
    %258 = arith.divf %256, %257 : vector<8x32xf32>
    %259 = vector.extract_strided_slice %252 {offsets = [0, 32], sizes = [8, 32], strides = [1, 1]} : vector<8x128xf32> to vector<8x32xf32>
    %260 = arith.negf %259 : vector<8x32xf32>
    %261 = math.exp %260 : vector<8x32xf32>
    %cst_62 = arith.constant 1.000000e+00 : f32
    %262 = vector.broadcast %cst_62 : f32 to vector<8x32xf32>
    %263 = arith.addf %262, %261 : vector<8x32xf32>
    %264 = arith.divf %262, %263 : vector<8x32xf32>
    %265 = vector.extract_strided_slice %252 {offsets = [0, 64], sizes = [8, 32], strides = [1, 1]} : vector<8x128xf32> to vector<8x32xf32>
    %266 = math.tanh %265 : vector<8x32xf32>
    %267 = vector.extract_strided_slice %252 {offsets = [0, 96], sizes = [8, 32], strides = [1, 1]} : vector<8x128xf32> to vector<8x32xf32>
    %268 = arith.negf %267 : vector<8x32xf32>
    %269 = math.exp %268 : vector<8x32xf32>
    %cst_63 = arith.constant 1.000000e+00 : f32
    %270 = vector.broadcast %cst_63 : f32 to vector<8x32xf32>
    %271 = arith.addf %270, %269 : vector<8x32xf32>
    %272 = arith.divf %270, %271 : vector<8x32xf32>
    %273 = arith.mulf %264, %188 : vector<8x32xf32>
    %274 = arith.mulf %258, %266 : vector<8x32xf32>
    %275 = arith.addf %273, %274 : vector<8x32xf32>
    %276 = math.tanh %275 : vector<8x32xf32>
    %277 = arith.mulf %272, %276 : vector<8x32xf32>
    %278 = vector.broadcast %207 : i32 to vector<8x1xi32>
    %279 = arith.cmpi sgt, %11, %278 : vector<8x1xi32>
    %280 = vector.shape_cast %279 : vector<8x1xi1> to vector<8x1xi1>
    %281 = vector.broadcast %280 : vector<8x1xi1> to vector<8x32xi1>
    %282 = arith.select %281, %277, %185 : vector<8x32xi1>, vector<8x32xf32>
    %283 = vector.shape_cast %279 : vector<8x1xi1> to vector<8x1xi1>
    %284 = vector.broadcast %283 : vector<8x1xi1> to vector<8x32xi1>
    %285 = arith.select %284, %275, %188 : vector<8x32xi1>, vector<8x32xf32>
    %cst_64 = arith.constant 0.000000e+00 : f32
    %286 = vector.shape_cast %240 : vector<8x1xi1> to vector<8x1xi1>
    %287 = vector.broadcast %286 : vector<8x1xi1> to vector<8x32xi1>
    %288 = vector.broadcast %cst_64 : f32 to vector<8x32xf32>
    %289 = arith.select %287, %243, %288 : vector<8x32xi1>, vector<8x32xf32>
    %290 = arith.truncf %289 : vector<8x32xf32> to vector<8x32xbf16>
    %291 = arith.index_cast %c2_i32 : i32 to index
    %c0_65 = arith.constant 0 : index
    %c0_66 = arith.constant 0 : index
    %292 = vector.load %arg6[%291, %c0_65, %c0_66] : memref<8x8x64xbf16, #tpu.memory_space<vmem>>, vector<1x8x32xbf16>
    %293 = vector.shape_cast %292 : vector<1x8x32xbf16> to vector<8x32xbf16>
    %294 = vector.shape_cast %290 : vector<8x32xbf16> to vector<1x8x32xbf16>
    tpu.vector_store %arg6[%291, %c0_65, %c0_66], %294 {strides = array<i32>} : memref<8x8x64xbf16, #tpu.memory_space<vmem>>, vector<1x8x32xbf16>,
    %cst_67 = arith.constant 0.000000e+00 : f32
    %295 = vector.shape_cast %279 : vector<8x1xi1> to vector<8x1xi1>
    %296 = vector.broadcast %295 : vector<8x1xi1> to vector<8x32xi1>
    %297 = vector.broadcast %cst_67 : f32 to vector<8x32xf32>
    %298 = arith.select %296, %282, %297 : vector<8x32xi1>, vector<8x32xf32>
    %299 = arith.truncf %298 : vector<8x32xf32> to vector<8x32xbf16>
    %300 = arith.index_cast %207 : i32 to index
    %c0_68 = arith.constant 0 : index
    %c32_69 = arith.constant 32 : index
    %301 = vector.load %arg6[%300, %c0_68, %c32_69] : memref<8x8x64xbf16, #tpu.memory_space<vmem>>, vector<1x8x32xbf16>
    %302 = vector.shape_cast %301 : vector<1x8x32xbf16> to vector<8x32xbf16>
    %303 = vector.shape_cast %299 : vector<8x32xbf16> to vector<1x8x32xbf16>
    tpu.vector_store %arg6[%300, %c0_68, %c32_69], %303 {strides = array<i32>} : memref<8x8x64xbf16, #tpu.memory_space<vmem>>, vector<1x8x32xbf16>,
    %c3_i32 = arith.constant 3 : i32
    %c7_i32_70 = arith.constant 7 : i32
    %304 = arith.subi %c7_i32_70, %c3_i32 : i32
    %305 = arith.index_cast %c3_i32 : i32 to index
    %c0_71 = arith.constant 0 : index
    %c0_72 = arith.constant 0 : index
    %306 = vector.load %arg7[%305, %c0_71, %c0_72] : memref<8x8x256xf32, #tpu.memory_space<vmem>>, vector<1x8x128xf32>
    %307 = vector.shape_cast %306 : vector<1x8x128xf32> to vector<8x128xf32>
    %308 = arith.truncf %243 : vector<8x32xf32> to vector<8x32xbf16>
    %cst_73 = arith.constant dense<0.000000e+00> : vector<8x128xf32>
    %309 = tpu.matmul %308, %9, %cst_73 {dimension_numbers = #tpu.dot_dimension_numbers<[1], [0], [0], [1], [0, 0, 1, 1], [], []>} : vector<8x32xbf16>, vector<32x128xbf16>, vector<8x128xf32> -> vector<8x128xf32>
    %310 = arith.addf %307, %309 : vector<8x128xf32>
    %311 = vector.extract_strided_slice %310 {offsets = [0, 0], sizes = [8, 32], strides = [1, 1]} : vector<8x128xf32> to vector<8x32xf32>
    %312 = arith.negf %311 : vector<8x32xf32>
    %313 = math.exp %312 : vector<8x32xf32>
    %cst_74 = arith.constant 1.000000e+00 : f32
    %314 = vector.broadcast %cst_74 : f32 to vector<8x32xf32>
    %315 = arith.addf %314, %313 : vector<8x32xf32>
    %316 = arith.divf %314, %315 : vector<8x32xf32>
    %317 = vector.extract_strided_slice %310 {offsets = [0, 32], sizes = [8, 32], strides = [1, 1]} : vector<8x128xf32> to vector<8x32xf32>
    %318 = arith.negf %317 : vector<8x32xf32>
    %319 = math.exp %318 : vector<8x32xf32>
    %cst_75 = arith.constant 1.000000e+00 : f32
    %320 = vector.broadcast %cst_75 : f32 to vector<8x32xf32>
    %321 = arith.addf %320, %319 : vector<8x32xf32>
    %322 = arith.divf %320, %321 : vector<8x32xf32>
    %323 = vector.extract_strided_slice %310 {offsets = [0, 64], sizes = [8, 32], strides = [1, 1]} : vector<8x128xf32> to vector<8x32xf32>
    %324 = math.tanh %323 : vector<8x32xf32>
    %325 = vector.extract_strided_slice %310 {offsets = [0, 96], sizes = [8, 32], strides = [1, 1]} : vector<8x128xf32> to vector<8x32xf32>
    %326 = arith.negf %325 : vector<8x32xf32>
    %327 = math.exp %326 : vector<8x32xf32>
    %cst_76 = arith.constant 1.000000e+00 : f32
    %328 = vector.broadcast %cst_76 : f32 to vector<8x32xf32>
    %329 = arith.addf %328, %327 : vector<8x32xf32>
    %330 = arith.divf %328, %329 : vector<8x32xf32>
    %331 = arith.mulf %322, %246 : vector<8x32xf32>
    %332 = arith.mulf %316, %324 : vector<8x32xf32>
    %333 = arith.addf %331, %332 : vector<8x32xf32>
    %334 = math.tanh %333 : vector<8x32xf32>
    %335 = arith.mulf %330, %334 : vector<8x32xf32>
    %336 = vector.broadcast %c3_i32 : i32 to vector<8x1xi32>
    %337 = arith.cmpi sgt, %11, %336 : vector<8x1xi32>
    %338 = vector.shape_cast %337 : vector<8x1xi1> to vector<8x1xi1>
    %339 = vector.broadcast %338 : vector<8x1xi1> to vector<8x32xi1>
    %340 = arith.select %339, %335, %243 : vector<8x32xi1>, vector<8x32xf32>
    %341 = vector.shape_cast %337 : vector<8x1xi1> to vector<8x1xi1>
    %342 = vector.broadcast %341 : vector<8x1xi1> to vector<8x32xi1>
    %343 = arith.select %342, %333, %246 : vector<8x32xi1>, vector<8x32xf32>
    %344 = arith.index_cast %304 : i32 to index
    %c0_77 = arith.constant 0 : index
    %c128_78 = arith.constant 128 : index
    %345 = vector.load %arg7[%344, %c0_77, %c128_78] : memref<8x8x256xf32, #tpu.memory_space<vmem>>, vector<1x8x128xf32>
    %346 = vector.shape_cast %345 : vector<1x8x128xf32> to vector<8x128xf32>
    %347 = arith.truncf %282 : vector<8x32xf32> to vector<8x32xbf16>
    %cst_79 = arith.constant dense<0.000000e+00> : vector<8x128xf32>
    %348 = tpu.matmul %347, %10, %cst_79 {dimension_numbers = #tpu.dot_dimension_numbers<[1], [0], [0], [1], [0, 0, 1, 1], [], []>} : vector<8x32xbf16>, vector<32x128xbf16>, vector<8x128xf32> -> vector<8x128xf32>
    %349 = arith.addf %346, %348 : vector<8x128xf32>
    %350 = vector.extract_strided_slice %349 {offsets = [0, 0], sizes = [8, 32], strides = [1, 1]} : vector<8x128xf32> to vector<8x32xf32>
    %351 = arith.negf %350 : vector<8x32xf32>
    %352 = math.exp %351 : vector<8x32xf32>
    %cst_80 = arith.constant 1.000000e+00 : f32
    %353 = vector.broadcast %cst_80 : f32 to vector<8x32xf32>
    %354 = arith.addf %353, %352 : vector<8x32xf32>
    %355 = arith.divf %353, %354 : vector<8x32xf32>
    %356 = vector.extract_strided_slice %349 {offsets = [0, 32], sizes = [8, 32], strides = [1, 1]} : vector<8x128xf32> to vector<8x32xf32>
    %357 = arith.negf %356 : vector<8x32xf32>
    %358 = math.exp %357 : vector<8x32xf32>
    %cst_81 = arith.constant 1.000000e+00 : f32
    %359 = vector.broadcast %cst_81 : f32 to vector<8x32xf32>
    %360 = arith.addf %359, %358 : vector<8x32xf32>
    %361 = arith.divf %359, %360 : vector<8x32xf32>
    %362 = vector.extract_strided_slice %349 {offsets = [0, 64], sizes = [8, 32], strides = [1, 1]} : vector<8x128xf32> to vector<8x32xf32>
    %363 = math.tanh %362 : vector<8x32xf32>
    %364 = vector.extract_strided_slice %349 {offsets = [0, 96], sizes = [8, 32], strides = [1, 1]} : vector<8x128xf32> to vector<8x32xf32>
    %365 = arith.negf %364 : vector<8x32xf32>
    %366 = math.exp %365 : vector<8x32xf32>
    %cst_82 = arith.constant 1.000000e+00 : f32
    %367 = vector.broadcast %cst_82 : f32 to vector<8x32xf32>
    %368 = arith.addf %367, %366 : vector<8x32xf32>
    %369 = arith.divf %367, %368 : vector<8x32xf32>
    %370 = arith.mulf %361, %285 : vector<8x32xf32>
    %371 = arith.mulf %355, %363 : vector<8x32xf32>
    %372 = arith.addf %370, %371 : vector<8x32xf32>
    %373 = math.tanh %372 : vector<8x32xf32>
    %374 = arith.mulf %369, %373 : vector<8x32xf32>
    %375 = vector.broadcast %304 : i32 to vector<8x1xi32>
    %376 = arith.cmpi sgt, %11, %375 : vector<8x1xi32>
    %377 = vector.shape_cast %376 : vector<8x1xi1> to vector<8x1xi1>
    %378 = vector.broadcast %377 : vector<8x1xi1> to vector<8x32xi1>
    %379 = arith.select %378, %374, %282 : vector<8x32xi1>, vector<8x32xf32>
    %380 = vector.shape_cast %376 : vector<8x1xi1> to vector<8x1xi1>
    %381 = vector.broadcast %380 : vector<8x1xi1> to vector<8x32xi1>
    %382 = arith.select %381, %372, %285 : vector<8x32xi1>, vector<8x32xf32>
    %cst_83 = arith.constant 0.000000e+00 : f32
    %383 = vector.shape_cast %337 : vector<8x1xi1> to vector<8x1xi1>
    %384 = vector.broadcast %383 : vector<8x1xi1> to vector<8x32xi1>
    %385 = vector.broadcast %cst_83 : f32 to vector<8x32xf32>
    %386 = arith.select %384, %340, %385 : vector<8x32xi1>, vector<8x32xf32>
    %387 = arith.truncf %386 : vector<8x32xf32> to vector<8x32xbf16>
    %388 = arith.index_cast %c3_i32 : i32 to index
    %c0_84 = arith.constant 0 : index
    %c0_85 = arith.constant 0 : index
    %389 = vector.load %arg6[%388, %c0_84, %c0_85] : memref<8x8x64xbf16, #tpu.memory_space<vmem>>, vector<1x8x32xbf16>
    %390 = vector.shape_cast %389 : vector<1x8x32xbf16> to vector<8x32xbf16>
    %391 = vector.shape_cast %387 : vector<8x32xbf16> to vector<1x8x32xbf16>
    tpu.vector_store %arg6[%388, %c0_84, %c0_85], %391 {strides = array<i32>} : memref<8x8x64xbf16, #tpu.memory_space<vmem>>, vector<1x8x32xbf16>,
    %cst_86 = arith.constant 0.000000e+00 : f32
    %392 = vector.shape_cast %376 : vector<8x1xi1> to vector<8x1xi1>
    %393 = vector.broadcast %392 : vector<8x1xi1> to vector<8x32xi1>
    %394 = vector.broadcast %cst_86 : f32 to vector<8x32xf32>
    %395 = arith.select %393, %379, %394 : vector<8x32xi1>, vector<8x32xf32>
    %396 = arith.truncf %395 : vector<8x32xf32> to vector<8x32xbf16>
    %397 = arith.index_cast %304 : i32 to index
    %c0_87 = arith.constant 0 : index
    %c32_88 = arith.constant 32 : index
    %398 = vector.load %arg6[%397, %c0_87, %c32_88] : memref<8x8x64xbf16, #tpu.memory_space<vmem>>, vector<1x8x32xbf16>
    %399 = vector.shape_cast %398 : vector<1x8x32xbf16> to vector<8x32xbf16>
    %400 = vector.shape_cast %396 : vector<8x32xbf16> to vector<1x8x32xbf16>
    tpu.vector_store %arg6[%397, %c0_87, %c32_88], %400 {strides = array<i32>} : memref<8x8x64xbf16, #tpu.memory_space<vmem>>, vector<1x8x32xbf16>,
    %c4_i32 = arith.constant 4 : i32
    %c7_i32_89 = arith.constant 7 : i32
    %401 = arith.subi %c7_i32_89, %c4_i32 : i32
    %402 = arith.index_cast %c4_i32 : i32 to index
    %c0_90 = arith.constant 0 : index
    %c0_91 = arith.constant 0 : index
    %403 = vector.load %arg7[%402, %c0_90, %c0_91] : memref<8x8x256xf32, #tpu.memory_space<vmem>>, vector<1x8x128xf32>
    %404 = vector.shape_cast %403 : vector<1x8x128xf32> to vector<8x128xf32>
    %405 = arith.truncf %340 : vector<8x32xf32> to vector<8x32xbf16>
    %cst_92 = arith.constant dense<0.000000e+00> : vector<8x128xf32>
    %406 = tpu.matmul %405, %9, %cst_92 {dimension_numbers = #tpu.dot_dimension_numbers<[1], [0], [0], [1], [0, 0, 1, 1], [], []>} : vector<8x32xbf16>, vector<32x128xbf16>, vector<8x128xf32> -> vector<8x128xf32>
    %407 = arith.addf %404, %406 : vector<8x128xf32>
    %408 = vector.extract_strided_slice %407 {offsets = [0, 0], sizes = [8, 32], strides = [1, 1]} : vector<8x128xf32> to vector<8x32xf32>
    %409 = arith.negf %408 : vector<8x32xf32>
    %410 = math.exp %409 : vector<8x32xf32>
    %cst_93 = arith.constant 1.000000e+00 : f32
    %411 = vector.broadcast %cst_93 : f32 to vector<8x32xf32>
    %412 = arith.addf %411, %410 : vector<8x32xf32>
    %413 = arith.divf %411, %412 : vector<8x32xf32>
    %414 = vector.extract_strided_slice %407 {offsets = [0, 32], sizes = [8, 32], strides = [1, 1]} : vector<8x128xf32> to vector<8x32xf32>
    %415 = arith.negf %414 : vector<8x32xf32>
    %416 = math.exp %415 : vector<8x32xf32>
    %cst_94 = arith.constant 1.000000e+00 : f32
    %417 = vector.broadcast %cst_94 : f32 to vector<8x32xf32>
    %418 = arith.addf %417, %416 : vector<8x32xf32>
    %419 = arith.divf %417, %418 : vector<8x32xf32>
    %420 = vector.extract_strided_slice %407 {offsets = [0, 64], sizes = [8, 32], strides = [1, 1]} : vector<8x128xf32> to vector<8x32xf32>
    %421 = math.tanh %420 : vector<8x32xf32>
    %422 = vector.extract_strided_slice %407 {offsets = [0, 96], sizes = [8, 32], strides = [1, 1]} : vector<8x128xf32> to vector<8x32xf32>
    %423 = arith.negf %422 : vector<8x32xf32>
    %424 = math.exp %423 : vector<8x32xf32>
    %cst_95 = arith.constant 1.000000e+00 : f32
    %425 = vector.broadcast %cst_95 : f32 to vector<8x32xf32>
    %426 = arith.addf %425, %424 : vector<8x32xf32>
    %427 = arith.divf %425, %426 : vector<8x32xf32>
    %428 = arith.mulf %419, %343 : vector<8x32xf32>
    %429 = arith.mulf %413, %421 : vector<8x32xf32>
    %430 = arith.addf %428, %429 : vector<8x32xf32>
    %431 = math.tanh %430 : vector<8x32xf32>
    %432 = arith.mulf %427, %431 : vector<8x32xf32>
    %433 = vector.broadcast %c4_i32 : i32 to vector<8x1xi32>
    %434 = arith.cmpi sgt, %11, %433 : vector<8x1xi32>
    %435 = vector.shape_cast %434 : vector<8x1xi1> to vector<8x1xi1>
    %436 = vector.broadcast %435 : vector<8x1xi1> to vector<8x32xi1>
    %437 = arith.select %436, %432, %340 : vector<8x32xi1>, vector<8x32xf32>
    %438 = vector.shape_cast %434 : vector<8x1xi1> to vector<8x1xi1>
    %439 = vector.broadcast %438 : vector<8x1xi1> to vector<8x32xi1>
    %440 = arith.select %439, %430, %343 : vector<8x32xi1>, vector<8x32xf32>
    %441 = arith.index_cast %401 : i32 to index
    %c0_96 = arith.constant 0 : index
    %c128_97 = arith.constant 128 : index
    %442 = vector.load %arg7[%441, %c0_96, %c128_97] : memref<8x8x256xf32, #tpu.memory_space<vmem>>, vector<1x8x128xf32>
    %443 = vector.shape_cast %442 : vector<1x8x128xf32> to vector<8x128xf32>
    %444 = arith.truncf %379 : vector<8x32xf32> to vector<8x32xbf16>
    %cst_98 = arith.constant dense<0.000000e+00> : vector<8x128xf32>
    %445 = tpu.matmul %444, %10, %cst_98 {dimension_numbers = #tpu.dot_dimension_numbers<[1], [0], [0], [1], [0, 0, 1, 1], [], []>} : vector<8x32xbf16>, vector<32x128xbf16>, vector<8x128xf32> -> vector<8x128xf32>
    %446 = arith.addf %443, %445 : vector<8x128xf32>
    %447 = vector.extract_strided_slice %446 {offsets = [0, 0], sizes = [8, 32], strides = [1, 1]} : vector<8x128xf32> to vector<8x32xf32>
    %448 = arith.negf %447 : vector<8x32xf32>
    %449 = math.exp %448 : vector<8x32xf32>
    %cst_99 = arith.constant 1.000000e+00 : f32
    %450 = vector.broadcast %cst_99 : f32 to vector<8x32xf32>
    %451 = arith.addf %450, %449 : vector<8x32xf32>
    %452 = arith.divf %450, %451 : vector<8x32xf32>
    %453 = vector.extract_strided_slice %446 {offsets = [0, 32], sizes = [8, 32], strides = [1, 1]} : vector<8x128xf32> to vector<8x32xf32>
    %454 = arith.negf %453 : vector<8x32xf32>
    %455 = math.exp %454 : vector<8x32xf32>
    %cst_100 = arith.constant 1.000000e+00 : f32
    %456 = vector.broadcast %cst_100 : f32 to vector<8x32xf32>
    %457 = arith.addf %456, %455 : vector<8x32xf32>
    %458 = arith.divf %456, %457 : vector<8x32xf32>
    %459 = vector.extract_strided_slice %446 {offsets = [0, 64], sizes = [8, 32], strides = [1, 1]} : vector<8x128xf32> to vector<8x32xf32>
    %460 = math.tanh %459 : vector<8x32xf32>
    %461 = vector.extract_strided_slice %446 {offsets = [0, 96], sizes = [8, 32], strides = [1, 1]} : vector<8x128xf32> to vector<8x32xf32>
    %462 = arith.negf %461 : vector<8x32xf32>
    %463 = math.exp %462 : vector<8x32xf32>
    %cst_101 = arith.constant 1.000000e+00 : f32
    %464 = vector.broadcast %cst_101 : f32 to vector<8x32xf32>
    %465 = arith.addf %464, %463 : vector<8x32xf32>
    %466 = arith.divf %464, %465 : vector<8x32xf32>
    %467 = arith.mulf %458, %382 : vector<8x32xf32>
    %468 = arith.mulf %452, %460 : vector<8x32xf32>
    %469 = arith.addf %467, %468 : vector<8x32xf32>
    %470 = math.tanh %469 : vector<8x32xf32>
    %471 = arith.mulf %466, %470 : vector<8x32xf32>
    %472 = vector.broadcast %401 : i32 to vector<8x1xi32>
    %473 = arith.cmpi sgt, %11, %472 : vector<8x1xi32>
    %474 = vector.shape_cast %473 : vector<8x1xi1> to vector<8x1xi1>
    %475 = vector.broadcast %474 : vector<8x1xi1> to vector<8x32xi1>
    %476 = arith.select %475, %471, %379 : vector<8x32xi1>, vector<8x32xf32>
    %477 = vector.shape_cast %473 : vector<8x1xi1> to vector<8x1xi1>
    %478 = vector.broadcast %477 : vector<8x1xi1> to vector<8x32xi1>
    %479 = arith.select %478, %469, %382 : vector<8x32xi1>, vector<8x32xf32>
    %cst_102 = arith.constant 0.000000e+00 : f32
    %480 = vector.shape_cast %434 : vector<8x1xi1> to vector<8x1xi1>
    %481 = vector.broadcast %480 : vector<8x1xi1> to vector<8x32xi1>
    %482 = vector.broadcast %cst_102 : f32 to vector<8x32xf32>
    %483 = arith.select %481, %437, %482 : vector<8x32xi1>, vector<8x32xf32>
    %484 = arith.truncf %483 : vector<8x32xf32> to vector<8x32xbf16>
    %485 = arith.index_cast %c4_i32 : i32 to index
    %c0_103 = arith.constant 0 : index
    %c0_104 = arith.constant 0 : index
    %486 = vector.load %arg6[%485, %c0_103, %c0_104] : memref<8x8x64xbf16, #tpu.memory_space<vmem>>, vector<1x8x32xbf16>
    %487 = vector.shape_cast %486 : vector<1x8x32xbf16> to vector<8x32xbf16>
    %488 = vector.shape_cast %484 : vector<8x32xbf16> to vector<1x8x32xbf16>
    tpu.vector_store %arg6[%485, %c0_103, %c0_104], %488 {strides = array<i32>} : memref<8x8x64xbf16, #tpu.memory_space<vmem>>, vector<1x8x32xbf16>,
    %cst_105 = arith.constant 0.000000e+00 : f32
    %489 = vector.shape_cast %473 : vector<8x1xi1> to vector<8x1xi1>
    %490 = vector.broadcast %489 : vector<8x1xi1> to vector<8x32xi1>
    %491 = vector.broadcast %cst_105 : f32 to vector<8x32xf32>
    %492 = arith.select %490, %476, %491 : vector<8x32xi1>, vector<8x32xf32>
    %493 = arith.truncf %492 : vector<8x32xf32> to vector<8x32xbf16>
    %494 = arith.index_cast %401 : i32 to index
    %c0_106 = arith.constant 0 : index
    %c32_107 = arith.constant 32 : index
    %495 = vector.load %arg6[%494, %c0_106, %c32_107] : memref<8x8x64xbf16, #tpu.memory_space<vmem>>, vector<1x8x32xbf16>
    %496 = vector.shape_cast %495 : vector<1x8x32xbf16> to vector<8x32xbf16>
    %497 = vector.shape_cast %493 : vector<8x32xbf16> to vector<1x8x32xbf16>
    tpu.vector_store %arg6[%494, %c0_106, %c32_107], %497 {strides = array<i32>} : memref<8x8x64xbf16, #tpu.memory_space<vmem>>, vector<1x8x32xbf16>,
    %c5_i32 = arith.constant 5 : i32
    %c7_i32_108 = arith.constant 7 : i32
    %498 = arith.subi %c7_i32_108, %c5_i32 : i32
    %499 = arith.index_cast %c5_i32 : i32 to index
    %c0_109 = arith.constant 0 : index
    %c0_110 = arith.constant 0 : index
    %500 = vector.load %arg7[%499, %c0_109, %c0_110] : memref<8x8x256xf32, #tpu.memory_space<vmem>>, vector<1x8x128xf32>
    %501 = vector.shape_cast %500 : vector<1x8x128xf32> to vector<8x128xf32>
    %502 = arith.truncf %437 : vector<8x32xf32> to vector<8x32xbf16>
    %cst_111 = arith.constant dense<0.000000e+00> : vector<8x128xf32>
    %503 = tpu.matmul %502, %9, %cst_111 {dimension_numbers = #tpu.dot_dimension_numbers<[1], [0], [0], [1], [0, 0, 1, 1], [], []>} : vector<8x32xbf16>, vector<32x128xbf16>, vector<8x128xf32> -> vector<8x128xf32>
    %504 = arith.addf %501, %503 : vector<8x128xf32>
    %505 = vector.extract_strided_slice %504 {offsets = [0, 0], sizes = [8, 32], strides = [1, 1]} : vector<8x128xf32> to vector<8x32xf32>
    %506 = arith.negf %505 : vector<8x32xf32>
    %507 = math.exp %506 : vector<8x32xf32>
    %cst_112 = arith.constant 1.000000e+00 : f32
    %508 = vector.broadcast %cst_112 : f32 to vector<8x32xf32>
    %509 = arith.addf %508, %507 : vector<8x32xf32>
    %510 = arith.divf %508, %509 : vector<8x32xf32>
    %511 = vector.extract_strided_slice %504 {offsets = [0, 32], sizes = [8, 32], strides = [1, 1]} : vector<8x128xf32> to vector<8x32xf32>
    %512 = arith.negf %511 : vector<8x32xf32>
    %513 = math.exp %512 : vector<8x32xf32>
    %cst_113 = arith.constant 1.000000e+00 : f32
    %514 = vector.broadcast %cst_113 : f32 to vector<8x32xf32>
    %515 = arith.addf %514, %513 : vector<8x32xf32>
    %516 = arith.divf %514, %515 : vector<8x32xf32>
    %517 = vector.extract_strided_slice %504 {offsets = [0, 64], sizes = [8, 32], strides = [1, 1]} : vector<8x128xf32> to vector<8x32xf32>
    %518 = math.tanh %517 : vector<8x32xf32>
    %519 = vector.extract_strided_slice %504 {offsets = [0, 96], sizes = [8, 32], strides = [1, 1]} : vector<8x128xf32> to vector<8x32xf32>
    %520 = arith.negf %519 : vector<8x32xf32>
    %521 = math.exp %520 : vector<8x32xf32>
    %cst_114 = arith.constant 1.000000e+00 : f32
    %522 = vector.broadcast %cst_114 : f32 to vector<8x32xf32>
    %523 = arith.addf %522, %521 : vector<8x32xf32>
    %524 = arith.divf %522, %523 : vector<8x32xf32>
    %525 = arith.mulf %516, %440 : vector<8x32xf32>
    %526 = arith.mulf %510, %518 : vector<8x32xf32>
    %527 = arith.addf %525, %526 : vector<8x32xf32>
    %528 = math.tanh %527 : vector<8x32xf32>
    %529 = arith.mulf %524, %528 : vector<8x32xf32>
    %530 = vector.broadcast %c5_i32 : i32 to vector<8x1xi32>
    %531 = arith.cmpi sgt, %11, %530 : vector<8x1xi32>
    %532 = vector.shape_cast %531 : vector<8x1xi1> to vector<8x1xi1>
    %533 = vector.broadcast %532 : vector<8x1xi1> to vector<8x32xi1>
    %534 = arith.select %533, %529, %437 : vector<8x32xi1>, vector<8x32xf32>
    %535 = vector.shape_cast %531 : vector<8x1xi1> to vector<8x1xi1>
    %536 = vector.broadcast %535 : vector<8x1xi1> to vector<8x32xi1>
    %537 = arith.select %536, %527, %440 : vector<8x32xi1>, vector<8x32xf32>
    %538 = arith.index_cast %498 : i32 to index
    %c0_115 = arith.constant 0 : index
    %c128_116 = arith.constant 128 : index
    %539 = vector.load %arg7[%538, %c0_115, %c128_116] : memref<8x8x256xf32, #tpu.memory_space<vmem>>, vector<1x8x128xf32>
    %540 = vector.shape_cast %539 : vector<1x8x128xf32> to vector<8x128xf32>
    %541 = arith.truncf %476 : vector<8x32xf32> to vector<8x32xbf16>
    %cst_117 = arith.constant dense<0.000000e+00> : vector<8x128xf32>
    %542 = tpu.matmul %541, %10, %cst_117 {dimension_numbers = #tpu.dot_dimension_numbers<[1], [0], [0], [1], [0, 0, 1, 1], [], []>} : vector<8x32xbf16>, vector<32x128xbf16>, vector<8x128xf32> -> vector<8x128xf32>
    %543 = arith.addf %540, %542 : vector<8x128xf32>
    %544 = vector.extract_strided_slice %543 {offsets = [0, 0], sizes = [8, 32], strides = [1, 1]} : vector<8x128xf32> to vector<8x32xf32>
    %545 = arith.negf %544 : vector<8x32xf32>
    %546 = math.exp %545 : vector<8x32xf32>
    %cst_118 = arith.constant 1.000000e+00 : f32
    %547 = vector.broadcast %cst_118 : f32 to vector<8x32xf32>
    %548 = arith.addf %547, %546 : vector<8x32xf32>
    %549 = arith.divf %547, %548 : vector<8x32xf32>
    %550 = vector.extract_strided_slice %543 {offsets = [0, 32], sizes = [8, 32], strides = [1, 1]} : vector<8x128xf32> to vector<8x32xf32>
    %551 = arith.negf %550 : vector<8x32xf32>
    %552 = math.exp %551 : vector<8x32xf32>
    %cst_119 = arith.constant 1.000000e+00 : f32
    %553 = vector.broadcast %cst_119 : f32 to vector<8x32xf32>
    %554 = arith.addf %553, %552 : vector<8x32xf32>
    %555 = arith.divf %553, %554 : vector<8x32xf32>
    %556 = vector.extract_strided_slice %543 {offsets = [0, 64], sizes = [8, 32], strides = [1, 1]} : vector<8x128xf32> to vector<8x32xf32>
    %557 = math.tanh %556 : vector<8x32xf32>
    %558 = vector.extract_strided_slice %543 {offsets = [0, 96], sizes = [8, 32], strides = [1, 1]} : vector<8x128xf32> to vector<8x32xf32>
    %559 = arith.negf %558 : vector<8x32xf32>
    %560 = math.exp %559 : vector<8x32xf32>
    %cst_120 = arith.constant 1.000000e+00 : f32
    %561 = vector.broadcast %cst_120 : f32 to vector<8x32xf32>
    %562 = arith.addf %561, %560 : vector<8x32xf32>
    %563 = arith.divf %561, %562 : vector<8x32xf32>
    %564 = arith.mulf %555, %479 : vector<8x32xf32>
    %565 = arith.mulf %549, %557 : vector<8x32xf32>
    %566 = arith.addf %564, %565 : vector<8x32xf32>
    %567 = math.tanh %566 : vector<8x32xf32>
    %568 = arith.mulf %563, %567 : vector<8x32xf32>
    %569 = vector.broadcast %498 : i32 to vector<8x1xi32>
    %570 = arith.cmpi sgt, %11, %569 : vector<8x1xi32>
    %571 = vector.shape_cast %570 : vector<8x1xi1> to vector<8x1xi1>
    %572 = vector.broadcast %571 : vector<8x1xi1> to vector<8x32xi1>
    %573 = arith.select %572, %568, %476 : vector<8x32xi1>, vector<8x32xf32>
    %574 = vector.shape_cast %570 : vector<8x1xi1> to vector<8x1xi1>
    %575 = vector.broadcast %574 : vector<8x1xi1> to vector<8x32xi1>
    %576 = arith.select %575, %566, %479 : vector<8x32xi1>, vector<8x32xf32>
    %cst_121 = arith.constant 0.000000e+00 : f32
    %577 = vector.shape_cast %531 : vector<8x1xi1> to vector<8x1xi1>
    %578 = vector.broadcast %577 : vector<8x1xi1> to vector<8x32xi1>
    %579 = vector.broadcast %cst_121 : f32 to vector<8x32xf32>
    %580 = arith.select %578, %534, %579 : vector<8x32xi1>, vector<8x32xf32>
    %581 = arith.truncf %580 : vector<8x32xf32> to vector<8x32xbf16>
    %582 = arith.index_cast %c5_i32 : i32 to index
    %c0_122 = arith.constant 0 : index
    %c0_123 = arith.constant 0 : index
    %583 = vector.load %arg6[%582, %c0_122, %c0_123] : memref<8x8x64xbf16, #tpu.memory_space<vmem>>, vector<1x8x32xbf16>
    %584 = vector.shape_cast %583 : vector<1x8x32xbf16> to vector<8x32xbf16>
    %585 = vector.shape_cast %581 : vector<8x32xbf16> to vector<1x8x32xbf16>
    tpu.vector_store %arg6[%582, %c0_122, %c0_123], %585 {strides = array<i32>} : memref<8x8x64xbf16, #tpu.memory_space<vmem>>, vector<1x8x32xbf16>,
    %cst_124 = arith.constant 0.000000e+00 : f32
    %586 = vector.shape_cast %570 : vector<8x1xi1> to vector<8x1xi1>
    %587 = vector.broadcast %586 : vector<8x1xi1> to vector<8x32xi1>
    %588 = vector.broadcast %cst_124 : f32 to vector<8x32xf32>
    %589 = arith.select %587, %573, %588 : vector<8x32xi1>, vector<8x32xf32>
    %590 = arith.truncf %589 : vector<8x32xf32> to vector<8x32xbf16>
    %591 = arith.index_cast %498 : i32 to index
    %c0_125 = arith.constant 0 : index
    %c32_126 = arith.constant 32 : index
    %592 = vector.load %arg6[%591, %c0_125, %c32_126] : memref<8x8x64xbf16, #tpu.memory_space<vmem>>, vector<1x8x32xbf16>
    %593 = vector.shape_cast %592 : vector<1x8x32xbf16> to vector<8x32xbf16>
    %594 = vector.shape_cast %590 : vector<8x32xbf16> to vector<1x8x32xbf16>
    tpu.vector_store %arg6[%591, %c0_125, %c32_126], %594 {strides = array<i32>} : memref<8x8x64xbf16, #tpu.memory_space<vmem>>, vector<1x8x32xbf16>,
    %c6_i32 = arith.constant 6 : i32
    %c7_i32_127 = arith.constant 7 : i32
    %595 = arith.subi %c7_i32_127, %c6_i32 : i32
    %596 = arith.index_cast %c6_i32 : i32 to index
    %c0_128 = arith.constant 0 : index
    %c0_129 = arith.constant 0 : index
    %597 = vector.load %arg7[%596, %c0_128, %c0_129] : memref<8x8x256xf32, #tpu.memory_space<vmem>>, vector<1x8x128xf32>
    %598 = vector.shape_cast %597 : vector<1x8x128xf32> to vector<8x128xf32>
    %599 = arith.truncf %534 : vector<8x32xf32> to vector<8x32xbf16>
    %cst_130 = arith.constant dense<0.000000e+00> : vector<8x128xf32>
    %600 = tpu.matmul %599, %9, %cst_130 {dimension_numbers = #tpu.dot_dimension_numbers<[1], [0], [0], [1], [0, 0, 1, 1], [], []>} : vector<8x32xbf16>, vector<32x128xbf16>, vector<8x128xf32> -> vector<8x128xf32>
    %601 = arith.addf %598, %600 : vector<8x128xf32>
    %602 = vector.extract_strided_slice %601 {offsets = [0, 0], sizes = [8, 32], strides = [1, 1]} : vector<8x128xf32> to vector<8x32xf32>
    %603 = arith.negf %602 : vector<8x32xf32>
    %604 = math.exp %603 : vector<8x32xf32>
    %cst_131 = arith.constant 1.000000e+00 : f32
    %605 = vector.broadcast %cst_131 : f32 to vector<8x32xf32>
    %606 = arith.addf %605, %604 : vector<8x32xf32>
    %607 = arith.divf %605, %606 : vector<8x32xf32>
    %608 = vector.extract_strided_slice %601 {offsets = [0, 32], sizes = [8, 32], strides = [1, 1]} : vector<8x128xf32> to vector<8x32xf32>
    %609 = arith.negf %608 : vector<8x32xf32>
    %610 = math.exp %609 : vector<8x32xf32>
    %cst_132 = arith.constant 1.000000e+00 : f32
    %611 = vector.broadcast %cst_132 : f32 to vector<8x32xf32>
    %612 = arith.addf %611, %610 : vector<8x32xf32>
    %613 = arith.divf %611, %612 : vector<8x32xf32>
    %614 = vector.extract_strided_slice %601 {offsets = [0, 64], sizes = [8, 32], strides = [1, 1]} : vector<8x128xf32> to vector<8x32xf32>
    %615 = math.tanh %614 : vector<8x32xf32>
    %616 = vector.extract_strided_slice %601 {offsets = [0, 96], sizes = [8, 32], strides = [1, 1]} : vector<8x128xf32> to vector<8x32xf32>
    %617 = arith.negf %616 : vector<8x32xf32>
    %618 = math.exp %617 : vector<8x32xf32>
    %cst_133 = arith.constant 1.000000e+00 : f32
    %619 = vector.broadcast %cst_133 : f32 to vector<8x32xf32>
    %620 = arith.addf %619, %618 : vector<8x32xf32>
    %621 = arith.divf %619, %620 : vector<8x32xf32>
    %622 = arith.mulf %613, %537 : vector<8x32xf32>
    %623 = arith.mulf %607, %615 : vector<8x32xf32>
    %624 = arith.addf %622, %623 : vector<8x32xf32>
    %625 = math.tanh %624 : vector<8x32xf32>
    %626 = arith.mulf %621, %625 : vector<8x32xf32>
    %627 = vector.broadcast %c6_i32 : i32 to vector<8x1xi32>
    %628 = arith.cmpi sgt, %11, %627 : vector<8x1xi32>
    %629 = vector.shape_cast %628 : vector<8x1xi1> to vector<8x1xi1>
    %630 = vector.broadcast %629 : vector<8x1xi1> to vector<8x32xi1>
    %631 = arith.select %630, %626, %534 : vector<8x32xi1>, vector<8x32xf32>
    %632 = vector.shape_cast %628 : vector<8x1xi1> to vector<8x1xi1>
    %633 = vector.broadcast %632 : vector<8x1xi1> to vector<8x32xi1>
    %634 = arith.select %633, %624, %537 : vector<8x32xi1>, vector<8x32xf32>
    %635 = arith.index_cast %595 : i32 to index
    %c0_134 = arith.constant 0 : index
    %c128_135 = arith.constant 128 : index
    %636 = vector.load %arg7[%635, %c0_134, %c128_135] : memref<8x8x256xf32, #tpu.memory_space<vmem>>, vector<1x8x128xf32>
    %637 = vector.shape_cast %636 : vector<1x8x128xf32> to vector<8x128xf32>
    %638 = arith.truncf %573 : vector<8x32xf32> to vector<8x32xbf16>
    %cst_136 = arith.constant dense<0.000000e+00> : vector<8x128xf32>
    %639 = tpu.matmul %638, %10, %cst_136 {dimension_numbers = #tpu.dot_dimension_numbers<[1], [0], [0], [1], [0, 0, 1, 1], [], []>} : vector<8x32xbf16>, vector<32x128xbf16>, vector<8x128xf32> -> vector<8x128xf32>
    %640 = arith.addf %637, %639 : vector<8x128xf32>
    %641 = vector.extract_strided_slice %640 {offsets = [0, 0], sizes = [8, 32], strides = [1, 1]} : vector<8x128xf32> to vector<8x32xf32>
    %642 = arith.negf %641 : vector<8x32xf32>
    %643 = math.exp %642 : vector<8x32xf32>
    %cst_137 = arith.constant 1.000000e+00 : f32
    %644 = vector.broadcast %cst_137 : f32 to vector<8x32xf32>
    %645 = arith.addf %644, %643 : vector<8x32xf32>
    %646 = arith.divf %644, %645 : vector<8x32xf32>
    %647 = vector.extract_strided_slice %640 {offsets = [0, 32], sizes = [8, 32], strides = [1, 1]} : vector<8x128xf32> to vector<8x32xf32>
    %648 = arith.negf %647 : vector<8x32xf32>
    %649 = math.exp %648 : vector<8x32xf32>
    %cst_138 = arith.constant 1.000000e+00 : f32
    %650 = vector.broadcast %cst_138 : f32 to vector<8x32xf32>
    %651 = arith.addf %650, %649 : vector<8x32xf32>
    %652 = arith.divf %650, %651 : vector<8x32xf32>
    %653 = vector.extract_strided_slice %640 {offsets = [0, 64], sizes = [8, 32], strides = [1, 1]} : vector<8x128xf32> to vector<8x32xf32>
    %654 = math.tanh %653 : vector<8x32xf32>
    %655 = vector.extract_strided_slice %640 {offsets = [0, 96], sizes = [8, 32], strides = [1, 1]} : vector<8x128xf32> to vector<8x32xf32>
    %656 = arith.negf %655 : vector<8x32xf32>
    %657 = math.exp %656 : vector<8x32xf32>
    %cst_139 = arith.constant 1.000000e+00 : f32
    %658 = vector.broadcast %cst_139 : f32 to vector<8x32xf32>
    %659 = arith.addf %658, %657 : vector<8x32xf32>
    %660 = arith.divf %658, %659 : vector<8x32xf32>
    %661 = arith.mulf %652, %576 : vector<8x32xf32>
    %662 = arith.mulf %646, %654 : vector<8x32xf32>
    %663 = arith.addf %661, %662 : vector<8x32xf32>
    %664 = math.tanh %663 : vector<8x32xf32>
    %665 = arith.mulf %660, %664 : vector<8x32xf32>
    %666 = vector.broadcast %595 : i32 to vector<8x1xi32>
    %667 = arith.cmpi sgt, %11, %666 : vector<8x1xi32>
    %668 = vector.shape_cast %667 : vector<8x1xi1> to vector<8x1xi1>
    %669 = vector.broadcast %668 : vector<8x1xi1> to vector<8x32xi1>
    %670 = arith.select %669, %665, %573 : vector<8x32xi1>, vector<8x32xf32>
    %671 = vector.shape_cast %667 : vector<8x1xi1> to vector<8x1xi1>
    %672 = vector.broadcast %671 : vector<8x1xi1> to vector<8x32xi1>
    %673 = arith.select %672, %663, %576 : vector<8x32xi1>, vector<8x32xf32>
    %cst_140 = arith.constant 0.000000e+00 : f32
    %674 = vector.shape_cast %628 : vector<8x1xi1> to vector<8x1xi1>
    %675 = vector.broadcast %674 : vector<8x1xi1> to vector<8x32xi1>
    %676 = vector.broadcast %cst_140 : f32 to vector<8x32xf32>
    %677 = arith.select %675, %631, %676 : vector<8x32xi1>, vector<8x32xf32>
    %678 = arith.truncf %677 : vector<8x32xf32> to vector<8x32xbf16>
    %679 = arith.index_cast %c6_i32 : i32 to index
    %c0_141 = arith.constant 0 : index
    %c0_142 = arith.constant 0 : index
    %680 = vector.load %arg6[%679, %c0_141, %c0_142] : memref<8x8x64xbf16, #tpu.memory_space<vmem>>, vector<1x8x32xbf16>
    %681 = vector.shape_cast %680 : vector<1x8x32xbf16> to vector<8x32xbf16>
    %682 = vector.shape_cast %678 : vector<8x32xbf16> to vector<1x8x32xbf16>
    tpu.vector_store %arg6[%679, %c0_141, %c0_142], %682 {strides = array<i32>} : memref<8x8x64xbf16, #tpu.memory_space<vmem>>, vector<1x8x32xbf16>,
    %cst_143 = arith.constant 0.000000e+00 : f32
    %683 = vector.shape_cast %667 : vector<8x1xi1> to vector<8x1xi1>
    %684 = vector.broadcast %683 : vector<8x1xi1> to vector<8x32xi1>
    %685 = vector.broadcast %cst_143 : f32 to vector<8x32xf32>
    %686 = arith.select %684, %670, %685 : vector<8x32xi1>, vector<8x32xf32>
    %687 = arith.truncf %686 : vector<8x32xf32> to vector<8x32xbf16>
    %688 = arith.index_cast %595 : i32 to index
    %c0_144 = arith.constant 0 : index
    %c32_145 = arith.constant 32 : index
    %689 = vector.load %arg6[%688, %c0_144, %c32_145] : memref<8x8x64xbf16, #tpu.memory_space<vmem>>, vector<1x8x32xbf16>
    %690 = vector.shape_cast %689 : vector<1x8x32xbf16> to vector<8x32xbf16>
    %691 = vector.shape_cast %687 : vector<8x32xbf16> to vector<1x8x32xbf16>
    tpu.vector_store %arg6[%688, %c0_144, %c32_145], %691 {strides = array<i32>} : memref<8x8x64xbf16, #tpu.memory_space<vmem>>, vector<1x8x32xbf16>,
    %c7_i32_146 = arith.constant 7 : i32
    %c7_i32_147 = arith.constant 7 : i32
    %692 = arith.subi %c7_i32_147, %c7_i32_146 : i32
    %693 = arith.index_cast %c7_i32_146 : i32 to index
    %c0_148 = arith.constant 0 : index
    %c0_149 = arith.constant 0 : index
    %694 = vector.load %arg7[%693, %c0_148, %c0_149] : memref<8x8x256xf32, #tpu.memory_space<vmem>>, vector<1x8x128xf32>
    %695 = vector.shape_cast %694 : vector<1x8x128xf32> to vector<8x128xf32>
    %696 = arith.truncf %631 : vector<8x32xf32> to vector<8x32xbf16>
    %cst_150 = arith.constant dense<0.000000e+00> : vector<8x128xf32>
    %697 = tpu.matmul %696, %9, %cst_150 {dimension_numbers = #tpu.dot_dimension_numbers<[1], [0], [0], [1], [0, 0, 1, 1], [], []>} : vector<8x32xbf16>, vector<32x128xbf16>, vector<8x128xf32> -> vector<8x128xf32>
    %698 = arith.addf %695, %697 : vector<8x128xf32>
    %699 = vector.extract_strided_slice %698 {offsets = [0, 0], sizes = [8, 32], strides = [1, 1]} : vector<8x128xf32> to vector<8x32xf32>
    %700 = arith.negf %699 : vector<8x32xf32>
    %701 = math.exp %700 : vector<8x32xf32>
    %cst_151 = arith.constant 1.000000e+00 : f32
    %702 = vector.broadcast %cst_151 : f32 to vector<8x32xf32>
    %703 = arith.addf %702, %701 : vector<8x32xf32>
    %704 = arith.divf %702, %703 : vector<8x32xf32>
    %705 = vector.extract_strided_slice %698 {offsets = [0, 32], sizes = [8, 32], strides = [1, 1]} : vector<8x128xf32> to vector<8x32xf32>
    %706 = arith.negf %705 : vector<8x32xf32>
    %707 = math.exp %706 : vector<8x32xf32>
    %cst_152 = arith.constant 1.000000e+00 : f32
    %708 = vector.broadcast %cst_152 : f32 to vector<8x32xf32>
    %709 = arith.addf %708, %707 : vector<8x32xf32>
    %710 = arith.divf %708, %709 : vector<8x32xf32>
    %711 = vector.extract_strided_slice %698 {offsets = [0, 64], sizes = [8, 32], strides = [1, 1]} : vector<8x128xf32> to vector<8x32xf32>
    %712 = math.tanh %711 : vector<8x32xf32>
    %713 = vector.extract_strided_slice %698 {offsets = [0, 96], sizes = [8, 32], strides = [1, 1]} : vector<8x128xf32> to vector<8x32xf32>
    %714 = arith.negf %713 : vector<8x32xf32>
    %715 = math.exp %714 : vector<8x32xf32>
    %cst_153 = arith.constant 1.000000e+00 : f32
    %716 = vector.broadcast %cst_153 : f32 to vector<8x32xf32>
    %717 = arith.addf %716, %715 : vector<8x32xf32>
    %718 = arith.divf %716, %717 : vector<8x32xf32>
    %719 = arith.mulf %710, %634 : vector<8x32xf32>
    %720 = arith.mulf %704, %712 : vector<8x32xf32>
    %721 = arith.addf %719, %720 : vector<8x32xf32>
    %722 = math.tanh %721 : vector<8x32xf32>
    %723 = arith.mulf %718, %722 : vector<8x32xf32>
    %724 = vector.broadcast %c7_i32_146 : i32 to vector<8x1xi32>
    %725 = arith.cmpi sgt, %11, %724 : vector<8x1xi32>
    %726 = vector.shape_cast %725 : vector<8x1xi1> to vector<8x1xi1>
    %727 = vector.broadcast %726 : vector<8x1xi1> to vector<8x32xi1>
    %728 = arith.select %727, %723, %631 : vector<8x32xi1>, vector<8x32xf32>
    %729 = vector.shape_cast %725 : vector<8x1xi1> to vector<8x1xi1>
    %730 = vector.broadcast %729 : vector<8x1xi1> to vector<8x32xi1>
    %731 = arith.select %730, %721, %634 : vector<8x32xi1>, vector<8x32xf32>
    %732 = arith.index_cast %692 : i32 to index
    %c0_154 = arith.constant 0 : index
    %c128_155 = arith.constant 128 : index
    %733 = vector.load %arg7[%732, %c0_154, %c128_155] : memref<8x8x256xf32, #tpu.memory_space<vmem>>, vector<1x8x128xf32>
    %734 = vector.shape_cast %733 : vector<1x8x128xf32> to vector<8x128xf32>
    %735 = arith.truncf %670 : vector<8x32xf32> to vector<8x32xbf16>
    %cst_156 = arith.constant dense<0.000000e+00> : vector<8x128xf32>
    %736 = tpu.matmul %735, %10, %cst_156 {dimension_numbers = #tpu.dot_dimension_numbers<[1], [0], [0], [1], [0, 0, 1, 1], [], []>} : vector<8x32xbf16>, vector<32x128xbf16>, vector<8x128xf32> -> vector<8x128xf32>
    %737 = arith.addf %734, %736 : vector<8x128xf32>
    %738 = vector.extract_strided_slice %737 {offsets = [0, 0], sizes = [8, 32], strides = [1, 1]} : vector<8x128xf32> to vector<8x32xf32>
    %739 = arith.negf %738 : vector<8x32xf32>
    %740 = math.exp %739 : vector<8x32xf32>
    %cst_157 = arith.constant 1.000000e+00 : f32
    %741 = vector.broadcast %cst_157 : f32 to vector<8x32xf32>
    %742 = arith.addf %741, %740 : vector<8x32xf32>
    %743 = arith.divf %741, %742 : vector<8x32xf32>
    %744 = vector.extract_strided_slice %737 {offsets = [0, 32], sizes = [8, 32], strides = [1, 1]} : vector<8x128xf32> to vector<8x32xf32>
    %745 = arith.negf %744 : vector<8x32xf32>
    %746 = math.exp %745 : vector<8x32xf32>
    %cst_158 = arith.constant 1.000000e+00 : f32
    %747 = vector.broadcast %cst_158 : f32 to vector<8x32xf32>
    %748 = arith.addf %747, %746 : vector<8x32xf32>
    %749 = arith.divf %747, %748 : vector<8x32xf32>
    %750 = vector.extract_strided_slice %737 {offsets = [0, 64], sizes = [8, 32], strides = [1, 1]} : vector<8x128xf32> to vector<8x32xf32>
    %751 = math.tanh %750 : vector<8x32xf32>
    %752 = vector.extract_strided_slice %737 {offsets = [0, 96], sizes = [8, 32], strides = [1, 1]} : vector<8x128xf32> to vector<8x32xf32>
    %753 = arith.negf %752 : vector<8x32xf32>
    %754 = math.exp %753 : vector<8x32xf32>
    %cst_159 = arith.constant 1.000000e+00 : f32
    %755 = vector.broadcast %cst_159 : f32 to vector<8x32xf32>
    %756 = arith.addf %755, %754 : vector<8x32xf32>
    %757 = arith.divf %755, %756 : vector<8x32xf32>
    %758 = arith.mulf %749, %673 : vector<8x32xf32>
    %759 = arith.mulf %743, %751 : vector<8x32xf32>
    %760 = arith.addf %758, %759 : vector<8x32xf32>
    %761 = math.tanh %760 : vector<8x32xf32>
    %762 = arith.mulf %757, %761 : vector<8x32xf32>
    %763 = vector.broadcast %692 : i32 to vector<8x1xi32>
    %764 = arith.cmpi sgt, %11, %763 : vector<8x1xi32>
    %765 = vector.shape_cast %764 : vector<8x1xi1> to vector<8x1xi1>
    %766 = vector.broadcast %765 : vector<8x1xi1> to vector<8x32xi1>
    %767 = arith.select %766, %762, %670 : vector<8x32xi1>, vector<8x32xf32>
    %768 = vector.shape_cast %764 : vector<8x1xi1> to vector<8x1xi1>
    %769 = vector.broadcast %768 : vector<8x1xi1> to vector<8x32xi1>
    %770 = arith.select %769, %760, %673 : vector<8x32xi1>, vector<8x32xf32>
    %cst_160 = arith.constant 0.000000e+00 : f32
    %771 = vector.shape_cast %725 : vector<8x1xi1> to vector<8x1xi1>
    %772 = vector.broadcast %771 : vector<8x1xi1> to vector<8x32xi1>
    %773 = vector.broadcast %cst_160 : f32 to vector<8x32xf32>
    %774 = arith.select %772, %728, %773 : vector<8x32xi1>, vector<8x32xf32>
    %775 = arith.truncf %774 : vector<8x32xf32> to vector<8x32xbf16>
    %776 = arith.index_cast %c7_i32_146 : i32 to index
    %c0_161 = arith.constant 0 : index
    %c0_162 = arith.constant 0 : index
    %777 = vector.load %arg6[%776, %c0_161, %c0_162] : memref<8x8x64xbf16, #tpu.memory_space<vmem>>, vector<1x8x32xbf16>
    %778 = vector.shape_cast %777 : vector<1x8x32xbf16> to vector<8x32xbf16>
    %779 = vector.shape_cast %775 : vector<8x32xbf16> to vector<1x8x32xbf16>
    tpu.vector_store %arg6[%776, %c0_161, %c0_162], %779 {strides = array<i32>} : memref<8x8x64xbf16, #tpu.memory_space<vmem>>, vector<1x8x32xbf16>,
    %cst_163 = arith.constant 0.000000e+00 : f32
    %780 = vector.shape_cast %764 : vector<8x1xi1> to vector<8x1xi1>
    %781 = vector.broadcast %780 : vector<8x1xi1> to vector<8x32xi1>
    %782 = vector.broadcast %cst_163 : f32 to vector<8x32xf32>
    %783 = arith.select %781, %767, %782 : vector<8x32xi1>, vector<8x32xf32>
    %784 = arith.truncf %783 : vector<8x32xf32> to vector<8x32xbf16>
    %785 = arith.index_cast %692 : i32 to index
    %c0_164 = arith.constant 0 : index
    %c32_165 = arith.constant 32 : index
    %786 = vector.load %arg6[%785, %c0_164, %c32_165] : memref<8x8x64xbf16, #tpu.memory_space<vmem>>, vector<1x8x32xbf16>
    %787 = vector.shape_cast %786 : vector<1x8x32xbf16> to vector<8x32xbf16>
    %788 = vector.shape_cast %784 : vector<8x32xbf16> to vector<1x8x32xbf16>
    tpu.vector_store %arg6[%785, %c0_164, %c32_165], %788 {strides = array<i32>} : memref<8x8x64xbf16, #tpu.memory_space<vmem>>, vector<1x8x32xbf16>,
    %c8_i32 = arith.constant 8 : i32
    return
  }
}

</mosaic_0001>

<bundles_post_ra>
// kernel: tpu_custom_call.1
= control target key start
LH: loop header
LB: loop body
LE: loop exit
PB: predicated region body
PF: predicated region fallthrough
CT: control target
= control target key end

     0   :  { %11 = vsyncpa [#allocation4], 0  ;;  %s2898_s0 = inlined_call_operand.hbm [shape: bf16[8,8,16], index: 0, kind: input, shape index: {}]   ;;  %s2899_s1 = inlined_call_operand.vmem [shape: s32[8,1], index: 1, kind: input, shape index: {}]   ;;  %s2900_s2 = inlined_call_operand.vmem [shape: bf16[16,256], index: 2, kind: input, shape index: {}]   ;;  %s2901_s3 = inlined_call_operand.hbm [shape: bf16[32,128], index: 3, kind: input, shape index: {}]   ;;  %s2902_s4 = inlined_call_operand.hbm [shape: bf16[32,128], index: 4, kind: input, shape index: {}]   ;;  %s2903_s5 = inlined_call_operand.vmem [shape: f32[1,256], index: 5, kind: input, shape index: {}]   ;;  %s2904_s6 = inlined_call_operand.hbm [shape: bf16[8,8,64], index: 6, kind: output, shape index: {}]  }
   0x1   :  { %12 = vsyncpa [#allocation7], 0 }
   0x2   :  { %13 = vsyncpa [#allocation5], 0  ;;  %s2160_s21 = smov [#allocation6]   ;;  %s2161_s23 = smov [#allocation3]  }
   0x3   :  { %s35_s22 = sshll.u32 %s2160_s21, 4  ;;  %s19_s24 = sshll.u32 %s2161_s23, 4  ;;  %s36_s22 = int_to_ptr.vmem [resolvable:$true] %s35_s22  ;;  %s2205_s24 = int_to_ptr.vmem [resolvable:$true] %s19_s24 }
   0x4   :  { %s2066_s27 = scalar_lea.hbm %s2901_s3, 256 }
   0x5   :  { %p2067_p0 = scmp.ne.s32.totalorder %s2901_s3, %s2066_s27  ;;  %p2070_p1 = scmp.lt.u32.totalorder %s2066_s27, %s2901_s3 }
   0x7   :  { %p2072_p2 = pnand %p2070_p1, %p2067_p0 }
   0x9   :  { %2075 = shalt.err (!%p2072_p2)
}
   0xa   :  { %s2076_s8 = scalar_lea.vmem %s36_s22, 256  ;;  %p2081_p4 = scmp.lt.s32.totalorder %s36_s22, %s36_s22 }
   0xb   :  { %p2077_p3 = scmp.ne.s32.totalorder %s36_s22, %s2076_s8  ;;  %p2082_p5 = scmp.lt.s32.totalorder %s2076_s8, %s2076_s8 }
   0xd   :  { %p2083_p6 = por %p2082_p5, %p2081_p4 }
   0xf   :  { %p2084_p7 = pnand %p2083_p6, %p2077_p3 }
  0x11   :  { %2087 = shalt.err (!%p2084_p7)
}
  0x12   :  { %s2162_s9 = smov 64   ;;  %s2163_s10 = smov 4  }
  0x13   :  { %41 = dma.hbm_to_vmem [thread:$0]  %s2901_s3, 256, %s36_s22, [#allocation7], %s2162_s9, %s2162_s9, %s2163_s10  }
  0x14   :  { %s2088_s15 = scalar_lea.hbm %s2898_s0, 512 }
  0x15   :  { %p2089_p8 = scmp.ne.s32.totalorder %s2898_s0, %s2088_s15  ;;  %p2092_p9 = scmp.lt.u32.totalorder %s2088_s15, %s2898_s0 }
  0x17   :  { %p2094_p10 = pnand %p2092_p9, %p2089_p8 }
  0x19   :  { %2097 = shalt.err (!%p2094_p10)
}
  0x1a   :  { %s2098_s20 = scalar_lea.vmem %s2205_s24, 512  ;;  %p2103_p12 = scmp.lt.s32.totalorder %s2205_s24, %s2205_s24 }
  0x1b   :  { %p2099_p11 = scmp.ne.s32.totalorder %s2205_s24, %s2098_s20  ;;  %p2104_p13 = scmp.lt.s32.totalorder %s2098_s20, %s2098_s20 }
  0x1d   :  { %p2105_p0 = por %p2104_p13, %p2103_p12 }
  0x1f   :  { %p2106_p1 = pnand %p2105_p0, %p2099_p11 }
  0x21   :  { %2109 = shalt.err (!%p2106_p1)
}
  0x22   :  { %25 = dma.hbm_to_vmem [thread:$0]  %s2898_s0, 512, %s2205_s24, [#allocation4], %s2162_s9, %s2162_s9, %s2163_s10  }
  0x23   :  { %s2164_s22 = smov [#allocation8]   ;;  %s2110_s27 = scalar_lea.hbm %s2902_s4, 256 }
  0x24   :  { %s47_s23 = sshll.u32 %s2164_s22, 4  ;;  %p2111_p2 = scmp.ne.s32.totalorder %s2902_s4, %s2110_s27  ;;  %s48_s23 = int_to_ptr.vmem [resolvable:$true] %s47_s23 }
  0x25   :  { %p2114_p3 = scmp.lt.u32.totalorder %s2110_s27, %s2902_s4 }
  0x27   :  { %p2116_p4 = pnand %p2114_p3, %p2111_p2 }
  0x29   :  { %2119 = shalt.err (!%p2116_p4)
}
  0x2a   :  { %s2120_s8 = scalar_lea.vmem %s48_s23, 256  ;;  %p2125_p6 = scmp.lt.s32.totalorder %s48_s23, %s48_s23 }
  0x2b   :  { %p2121_p5 = scmp.ne.s32.totalorder %s48_s23, %s2120_s8  ;;  %p2126_p7 = scmp.lt.s32.totalorder %s2120_s8, %s2120_s8 }
  0x2d   :  { %p2127_p8 = por %p2126_p7, %p2125_p6 }
  0x2f   :  { %p2128_p9 = pnand %p2127_p8, %p2121_p5 }
  0x31   :  { %2131 = shalt.err (!%p2128_p9)
}
  0x32   :  { %53 = dma.hbm_to_vmem [thread:$0]  %s2902_s4, 256, %s48_s23, [#allocation7], %s2162_s9, %s2162_s9, %s2163_s10  }
  0x33   :  { %2154 = dma.done.wait [#allocation4], 512  }
  0x34   :  { %2155 = vsyncadd [#allocation4], 4294966784 }
  0x35   :  { %2156 = dma.done.wait [#allocation7], 512  }
  0x36   :  { %2157 = vsyncadd [#allocation7], 4294966784  ;;  %v2165_v0 = vmov 0.0   ;;  %v2166_v1 = vmov 0   ;;  %vm2167_vm0 = vmmov 0   ;;  %v2266_v3 = vld [vmem:[#allocation6] sm:$0xff]   ;;  %v78_v12 = vlaneseq }
  0x37   :  { %1783 = vmatprep.subr.bf16.mxu1 %v2165_v0  ;;  %163 = vmatprep.mubr.bf16.mxu0 %v2166_v1  ;;  %v1923_v2 = vld [vmem:[%s2900_s2 + $0x4] ss:$8 sps:$4 sm:$0xff]   ;;  %v1926_v4 = vld [vmem:[%s2900_s2] ss:$8 sps:$4 sm:$0xff]   ;;  %vm118_vm1 = vcmask 130048   ;;  %v2278_v7 = vld [vmem:[#allocation8] sm:$0xff]  }
  0x38   :  { %1787 = vmatprep.mubr.msk.bf16.mxu1 %vm2167_vm0, %v2165_v0  ;;  %1921 = vset.pattern.permute.xlu0 %v2166_v1  ;;  %v1927_v5 = vld [vmem:[#allocation3] sm:$0xff]   ;;  %v2273_v6 = vld [vmem:[#allocation6 + $0x8] sm:$0xff]   ;;  %v2286_v9 = vld [vmem:[#allocation8 + $0x8] sm:$0xff]   ;;  %v79_v13 = vshrl.u32 %v78_v12, 7  ;;  %vm242_vm6 = vcmask 261120   ;;  %s2169_s16 = smov [#allocation9]  }
  0x39   :  { %1922 = vset.pattern.permute.xlu1 %v2166_v1  ;;  %131 = vmatprep.subr.bf16.mxu0 %v1923_v2  ;;  %v1929_v8 = vld [vmem:[#allocation3 + $0x8] sm:$0xff]   ;;  %v1930_v10 = vld [vmem:[#allocation3 + $0x10] sm:$0xff]   ;;  %v1933_v11 = vld [vmem:[#allocation3 + $0x18] sm:$0xff]   ;;  %s1646_s17 = sshll.u32 %s2169_s16, 4  ;;  %s1647_s17 = int_to_ptr.vmem [resolvable:$true] %s1646_s17 }
  0x3a   :  { %1784 = vmatpush3.bf16.msra.mxu1 %v2266_v3  ;;  %132 = vmatpush1.bf16.msra.mxu0 %v1926_v4  ;;  %v80_v14 = vsub.s32 0, %v79_v13  ;;  %v76_v15 = vld [vmem:[%s2903_s5] sm:$0x3]  ;;  %v84_v16 = vsub.s32 1, %v79_v13  ;;  %s2132_s18 = scalar_lea.vmem %s1647_s17, 512  ;;  %p2137_p11 = scmp.lt.s32.totalorder %s1647_s17, %s1647_s17 }
  0x3b   :  { %1785 = vmatprep.subr.bf16.mxu1 %v2165_v0  ;;  %1815 = vmatprep.subr.bf16.mxu0 %v2165_v0  ;;  %v2344_v62 = vld [vmem:[%s2899_s1] sm:$0xff]  ;;  %s2168_s1 = smov 32   ;;  %p2133_p10 = scmp.ne.s32.totalorder %s1647_s17, %s2132_s18 }
  0x3c   :  { %v81_v17 = vrot.slane %v76_v15, %v80_v14  ;;  %v85_v18 = vrot.slane %v76_v15, %v84_v16  ;;  %vm311_vm2 = vcmp.gt.s32.totalorder %v2344_v62, 0  ;;  %vm398_vm3 = vcmp.gt.s32.totalorder %v2344_v62, 7  ;;  %p2138_p12 = scmp.lt.s32.totalorder %s2132_s18, %s2132_s18 }
  0x3d   :  { %1665 = vmatmul.mubr.msk.bf16.vlgmr.msra.gmra.mrb[0].mxu0 %vm118_vm1, %v1927_v5  ;;  %v312_v2 = vsel %vm311_vm2, 1, %v2166_v1  ;;  %vm497_vm7 = vcmp.gt.s32.totalorder %v2344_v62, 1  ;;  %vm577_vm8 = vcmp.gt.s32.totalorder %v2344_v62, 6  ;;  %vm679_vm11 = vcmp.gt.s32.totalorder %v2344_v62, 2 }
  0x3e   :  { %1786 = vmatpush3.bf16.msra.mxu1 %v2273_v6  ;;  %173 = vmatprep.mubr.bf16.mxu0 %v2166_v1  ;;  %vm761_vm12 = vcmp.gt.s32.totalorder %v2344_v62, 5  ;;  %vm863_vm15 = vcmp.gt.s32.totalorder %v2344_v62, 3  ;;  %p2139_p13 = por %p2138_p12, %p2137_p11 }
  0x3f   :  { %1791 = vmatprep.subr.bf16.mxu1 %v2165_v0  ;;  %1816 = vmatpush3.bf16.msra.mxu0 %v2266_v3 }
  0x40   :  { %1817 = vmatprep.subr.bf16.mxu0 %v2165_v0  ;;  %p2140_p0 = pnand %p2139_p13, %p2133_p10 }
  0x41   :  { %1788 = vmatmul.mubr.bf16.vlgmr.msra.gmra.mrb[0].mxu1 %v2166_v1 }
  0x42   :  { %1792 = vmatpush3.bf16.msra.mxu1 %v2278_v7  ;;  %1795 = vmatprep.mubr.msk.bf16.mxu1 %vm2167_vm0, %v2165_v0 }
  0x43   :  { %1793 = vmatprep.subr.bf16.mxu1 %v2165_v0  ;;  %1818 = vmatpush3.bf16.msra.mxu0 %v2273_v6 }
  0x44   :  { %1831 = vmatprep.subr.bf16.mxu0 %v2165_v0 }
  0x45   :  { %1666 = vmatmul.mubr.msk.bf16.gmra.mrb[4].mxu0 %vm118_vm1, %v1929_v8 }
  0x46   :  { %1794 = vmatpush3.bf16.msra.mxu1 %v2286_v9  ;;  %183 = vmatprep.mubr.bf16.mxu0 %v2166_v1 }
  0x47   :  { %1799 = vmatprep.subr.bf16.mxu1 %v2165_v0 }
  0x49   :  { %1796 = vmatmul.mubr.bf16.vlgmr.msra.gmra.mrb[4].mxu1 %v2166_v1 }
  0x4a   :  { %1800 = vmatpush3.bf16.msra.mxu1 %v2266_v3  ;;  %1803 = vmatprep.mubr.msk.bf16.mxu1 %vm2167_vm0, %v2165_v0 }
  0x4b   :  { %1801 = vmatprep.subr.bf16.mxu1 %v2165_v0 }
  0x4d   :  { %1667 = vmatmul.mubr.msk.bf16.gmra.mrb[8].mxu0 %vm118_vm1, %v1930_v10 }
  0x4e   :  { %1802 = vmatpush3.bf16.msra.mxu1 %v2273_v6  ;;  %193 = vmatprep.mubr.bf16.mxu0 %v2166_v1 }
  0x4f   :  { %1807 = vmatprep.subr.bf16.mxu1 %v2165_v0 }
  0x55   :  { %1668 = vmatmul.mubr.msk.bf16.gmra.mrb[12].mxu0 %vm118_vm1, %v1933_v11  ;;  %vm945_vm1 = vcmp.gt.s32.totalorder %v2344_v62, 4 }
  0x56   :  { %1819 = vmatprep.mubr.msk.bf16.mxu0 %vm2167_vm0, %v2165_v0 }
 0x110   :  { %v165_v19 = vpop.f32.mrb[0].mxu0 }
 0x111   :  { %v166_v20 = vadd.f32 %v165_v19, %v81_v17  ;;  %v167_v21 = vpop.f32.mrb[1].mxu0 }
 0x112   :  { %v2312_v22 = vadd.f32 %v167_v21, %v85_v18  ;;  %v169_v23 = vpop.f32.mrb[2].mxu0 }
 0x113   :  { %v2314_v24 = vadd.f32 %v169_v23, %v81_v17  ;;  %v171_v25 = vpop.f32.mrb[3].mxu0 }
 0x114   :  { %v280_v26 = vpop.f32.mrb[0].mxu1  ;;  %v2316_v27 = vadd.f32 %v171_v25, %v85_v18  ;;  %v399_v25 = vsel %vm398_vm3, 1, %v2166_v1 }
 0x115   :  { %v286_v28 = vadd.f32 %v280_v26, %v166_v20  ;;  %v1789_v29 = vpop.f32.mrb[1].mxu1 }
 0x116   :  { %v283_v30 = vpop.f32.mrb[2].mxu1 }
 0x117   :  { %v1790_v31 = vpop.f32.mrb[3].mxu1  ;;  %1934 = vtanh.f32 %v286_v28  ;;  %v1671_v4 = vmul.f32 -1.442695, %v286_v28 }
 0x118   :  { %v175_v32 = vpop.f32.mrb[4].mxu0 }
 0x119   :  { %v2318_v33 = vadd.f32 %v175_v32, %v81_v17  ;;  %v177_v34 = vpop.f32.mrb[5].mxu0 }
 0x11a   :  { %v2320_v35 = vadd.f32 %v177_v34, %v85_v18  ;;  %v179_v36 = vpop.f32.mrb[6].mxu0 }
 0x11b   :  { %v2322_v37 = vadd.f32 %v179_v36, %v81_v17  ;;  %v181_v38 = vpop.f32.mrb[7].mxu0 }
 0x11c   :  { %v367_v39 = vpop.f32.mrb[4].mxu1  ;;  %v2324_v40 = vadd.f32 %v181_v38, %v85_v18 }
 0x11d   :  { %v1797_v41 = vpop.f32.mrb[5].mxu1 }
 0x11e   :  { %v370_v42 = vpop.f32.mrb[6].mxu1 }
 0x11f   :  { %v1798_v43 = vpop.f32.mrb[7].mxu1 }
 0x120   :  { %v185_v45 = vpop.f32.mrb[8].mxu0 }
 0x121   :  { %v1935_v44 = vpop.eup %1934  ;;  %v2326_v46 = vadd.f32 %v185_v45, %v81_v17  ;;  %v187_v47 = vpop.f32.mrb[9].mxu0 }
 0x122   :  { %296 = vrot.lane.b32.xlu0 %v1935_v44, %s2162_s9  ;;  %v2329_v48 = vadd.f32 %v187_v47, %v85_v18  ;;  %v189_v49 = vpop.f32.mrb[10].mxu0 }
 0x123   :  { %v2331_v50 = vadd.f32 %v189_v49, %v81_v17  ;;  %v191_v51 = vpop.f32.mrb[11].mxu0 }
 0x124   :  { %v2333_v52 = vadd.f32 %v191_v51, %v85_v18 }
 0x128   :  { %v195_v53 = vpop.f32.mrb[12].mxu0 }
 0x129   :  { %v2335_v54 = vadd.f32 %v195_v53, %v81_v17  ;;  %v197_v55 = vpop.f32.mrb[13].mxu0 }
 0x12a   :  { %v2337_v56 = vadd.f32 %v197_v55, %v85_v18  ;;  %v199_v57 = vpop.f32.mrb[14].mxu0 }
 0x12b   :  { %v2339_v58 = vadd.f32 %v199_v57, %v81_v17  ;;  %v201_v59 = vpop.f32.mrb[15].mxu0 }
 0x12c   :  { %v202_v60 = vadd.f32 %v201_v59, %v85_v18 }
 0x12e   :  { %v373_v61 = vadd.f32 %v367_v39, %v202_v60 }
 0x130   :  { %1936 = vtanh.f32 %v373_v61  ;;  %v1674_v10 = vmul.f32 -1.442695, %v373_v61 }
 0x131   :  { %1938 = vpow2.f32 %v1671_v4 }
 0x13a   :  { %v1937_v63 = vpop.eup %1936 }
 0x13b   :  { %383 = vrot.lane.b32.xlu0 %v1937_v63, %s2162_s9  ;;  %v1939_v5 = vpop.eup %1938 }
 0x13c   :  { %v290_v8 = vadd.f32 1.0, %v1939_v5 }
 0x13e   :  { %1940 = vrcp.f32 %v290_v8 }
 0x13f   :  { %314 = vperm.xlu0 %1921, %v312_v2   ;;  %1942 = vpow2.f32 %v1674_v10 }
 0x148   :  { %v1941_v11 = vpop.eup %1940 }
 0x149   :  { %v1943_v14 = vpop.eup %1942  ;;  %v294_v19 = vmul.f32 0.0, %v1941_v11 }
 0x14a   :  { %v377_v15 = vadd.f32 1.0, %v1943_v14 }
 0x14c   :  { %1944 = vrcp.f32 %v377_v15 }
 0x156   :  { %v1945_v16 = vpop.eup %1944 }
 0x157   :  { %v381_v26 = vmul.f32 0.0, %v1945_v16 }
 0x194   :  { %v297_v12 = vpop.permute.xlu0 %296 }
 0x195   :  { %v299_v13 = vmul.f32 %v1941_v11, %v297_v12 }
 0x197   :  { %301 = vrot.lane.b32.xlu1 %v299_v13, %s2168_s1 }
 0x1ad   :  { %v384_v17 = vpop.permute.xlu0 %383 }
 0x1ae   :  { %v386_v18 = vmul.f32 %v1945_v16, %v384_v17 }
 0x1b0   :  { %388 = vrot.lane.b32.xlu1 %v386_v18, %s2168_s1 }
 0x1be   :  { %v2361_v31 = vpop.permute.xlu0 %314 }
 0x1bf   :  { %vm316_vm4 = vcmp.eq.s32.totalorder %v2361_v31, 1 }
 0x209   :  { %v302_v20 = vpop.permute.xlu1 %301 }
 0x20a   :  { %v2351_v21 = vadd.f32 %v302_v20, %v294_v19  ;;  %v578_v20 = vsel %vm577_vm8, 1, %v2166_v1 }
 0x20c   :  { %1946 = vtanh.f32 %v2351_v21 }
 0x216   :  { %v1947_v23 = vpop.eup %1946 }
 0x217   :  { %307 = vrot.lane.b32.xlu1 %v1947_v23, %s2162_s9  ;;  %v2414_v23 = vsel %vm316_vm4, %v2351_v21, 0.0 }
 0x21b   :  { %401 = vperm.xlu1 %1922, %v399_v25  }
 0x222   :  { %v389_v28 = vpop.permute.xlu1 %388 }
 0x223   :  { %v2357_v29 = vadd.f32 %v389_v28, %v381_v26 }
 0x225   :  { %1948 = vtanh.f32 %v2357_v29 }
 0x22f   :  { %v1949_v30 = vpop.eup %1948 }
 0x230   :  { %394 = vrot.lane.b32.xlu0 %v1949_v30, %s2162_s9 }
 0x289   :  { %v308_v32 = vpop.permute.xlu1 %307 }
 0x28a   :  { %v310_v34 = vmul.f32 %v1941_v11, %v308_v32 }
 0x28c   :  { %v2366_v36 = vsel %vm316_vm4, %v310_v34, 0.0 }
 0x28d   :  { %v2370_v38 = vpack.c.bf16 %v2366_v36, %v2366_v36 }
 0x28f   :  { %427 = vrot.lane.b32.xlu1 %v2370_v38, %s2168_s1 }
 0x29a   :  { %v2374_v39 = vpop.permute.xlu1 %401 }
 0x29b   :  { %vm403_vm5 = vcmp.eq.s32.totalorder %v2374_v39, 1 }
 0x29c   :  { %v2424_v32 = vsel %vm403_vm5, %v2357_v29, 0.0 }
 0x2a2   :  { %v395_v41 = vpop.permute.xlu0 %394 }
 0x2a3   :  { %v397_v42 = vmul.f32 %v1945_v16, %v395_v41 }
 0x2a5   :  { %v2379_v43 = vsel %vm403_vm5, %v397_v42, 0.0 }
 0x2a6   :  { %v2383_v44 = vpack.c.bf16 %v2379_v43, %v2379_v43 }
 0x2a8   :  { %507 = vrot.lane.b32.xlu0 %v2383_v44, %s2168_s1 }
 0x301   :  { %v428_v45 = vpop.permute.xlu1 %427 }
 0x302   :  { %1804 = vmatmul.mubr.msk.bf16.vlgmr.msra.gmra.mrb[8].mxu1 %vm242_vm6, %v428_v45 }
 0x303   :  { %1808 = vmatpush3.bf16.msra.mxu1 %v2278_v7  ;;  %1811 = vmatprep.mubr.msk.bf16.mxu1 %vm2167_vm0, %v2165_v0 }
 0x304   :  { %1809 = vmatprep.subr.bf16.mxu1 %v2165_v0 }
 0x307   :  { %1810 = vmatpush3.bf16.msra.mxu1 %v2286_v9 }
 0x308   :  { %1823 = vmatprep.subr.bf16.mxu1 %v2165_v0 }
 0x31a   :  { %v508_v47 = vpop.permute.xlu0 %507 }
 0x31b   :  { %1812 = vmatmul.mubr.msk.bf16.vlgmr.msra.gmra.mrb[12].mxu1 %vm242_vm6, %v508_v47 }
 0x31c   :  { %1824 = vmatpush3.bf16.msra.mxu1 %v2278_v7  ;;  %1827 = vmatprep.mubr.msk.bf16.mxu1 %vm2167_vm0, %v2165_v0 }
 0x31d   :  { %1825 = vmatprep.subr.bf16.mxu1 %v2165_v0 }
 0x320   :  { %1826 = vmatpush3.bf16.msra.mxu1 %v2286_v9 }
 0x321   :  { %1839 = vmatprep.subr.bf16.mxu1 %v2165_v0 }
 0x3d5   :  { %v466_v49 = vpop.f32.mrb[8].mxu1 }
 0x3d6   :  { %v472_v51 = vadd.f32 %v466_v49, %v2314_v24  ;;  %v1805_v53 = vpop.f32.mrb[9].mxu1 }
 0x3d7   :  { %v469_v55 = vpop.f32.mrb[10].mxu1 }
 0x3d8   :  { %1950 = vtanh.f32 %v472_v51  ;;  %v1806_v57 = vpop.f32.mrb[11].mxu1  ;;  %v1678_v8 = vmul.f32 -1.442695, %v472_v51 }
 0x3e2   :  { %v1951_v59 = vpop.eup %1950 }
 0x3e3   :  { %482 = vrot.lane.b32.xlu1 %v1951_v59, %s2162_s9 }
 0x3ee   :  { %v546_v60 = vpop.f32.mrb[12].mxu1 }
 0x3ef   :  { %v552_v61 = vadd.f32 %v546_v60, %v2337_v56  ;;  %v1813_v63 = vpop.f32.mrb[13].mxu1  ;;  %v498_v56 = vsel %vm497_vm7, 1, %v2166_v1 }
 0x3f0   :  { %v549_v2 = vpop.f32.mrb[14].mxu1 }
 0x3f1   :  { %1952 = vtanh.f32 %v552_v61  ;;  %v1814_v4 = vpop.f32.mrb[15].mxu1  ;;  %v1680_v11 = vmul.f32 -1.442695, %v552_v61 }
 0x3f2   :  { %1954 = vpow2.f32 %v1678_v8 }
 0x3fb   :  { %v1953_v5 = vpop.eup %1952 }
 0x3fc   :  { %562 = vrot.lane.b32.xlu0 %v1953_v5, %s2162_s9  ;;  %v1955_v24 = vpop.eup %1954 }
 0x3fd   :  { %v476_v10 = vadd.f32 1.0, %v1955_v24 }
 0x3ff   :  { %1956 = vrcp.f32 %v476_v10 }
 0x400   :  { %1958 = vpow2.f32 %v1680_v11 }
 0x409   :  { %v1957_v12 = vpop.eup %1956 }
 0x40a   :  { %v1959_v15 = vpop.eup %1958  ;;  %v480_v25 = vmul.f32 %v1957_v12, %v2414_v23 }
 0x40b   :  { %v556_v16 = vadd.f32 1.0, %v1959_v15 }
 0x40d   :  { %1960 = vrcp.f32 %v556_v16 }
 0x417   :  { %v1961_v17 = vpop.eup %1960 }
 0x418   :  { %v560_v34 = vmul.f32 %v1961_v17, %v2424_v32 }
 0x455   :  { %v483_v13 = vpop.permute.xlu1 %482 }
 0x456   :  { %v485_v14 = vmul.f32 %v1957_v12, %v483_v13 }
 0x458   :  { %487 = vrot.lane.b32.xlu1 %v485_v14, %s2168_s1 }
 0x45c   :  { %500 = vperm.xlu1 %1922, %v498_v56  }
 0x46e   :  { %v563_v18 = vpop.permute.xlu0 %562 }
 0x46f   :  { %v565_v19 = vmul.f32 %v1961_v17, %v563_v18 }
 0x471   :  { %567 = vrot.lane.b32.xlu0 %v565_v19, %s2168_s1 }
 0x475   :  { %580 = vperm.xlu0 %1921, %v578_v20  }
 0x4ca   :  { %v488_v26 = vpop.permute.xlu1 %487 }
 0x4cb   :  { %v2417_v28 = vadd.f32 %v488_v26, %v480_v25 }
 0x4cd   :  { %1962 = vtanh.f32 %v2417_v28 }
 0x4d7   :  { %v1963_v30 = vpop.eup %1962 }
 0x4d8   :  { %493 = vrot.lane.b32.xlu1 %v1963_v30, %s2162_s9 }
 0x4db   :  { %v2431_v45 = vpop.permute.xlu1 %500 }
 0x4dc   :  { %vm502_vm9 = vcmp.eq.s32.totalorder %v2431_v45, 1 }
 0x4e3   :  { %v568_v41 = vpop.permute.xlu0 %567 }
 0x4e4   :  { %v2427_v21 = vadd.f32 %v568_v41, %v560_v34  ;;  %v762_v41 = vsel %vm761_vm12, 1, %v2166_v1 }
 0x4e6   :  { %1964 = vtanh.f32 %v2427_v21 }
 0x4f0   :  { %v1965_v42 = vpop.eup %1964 }
 0x4f1   :  { %573 = vrot.lane.b32.xlu0 %v1965_v42, %s2162_s9  ;;  %v2487_v42 = vsel %vm502_vm9, %v2417_v28, %v2414_v23 }
 0x4f4   :  { %v2445_v53 = vpop.permute.xlu0 %580 }
 0x4f5   :  { %vm582_vm10 = vcmp.eq.s32.totalorder %v2445_v53, 1 }
 0x54a   :  { %v494_v47 = vpop.permute.xlu1 %493 }
 0x54b   :  { %v2433_v49 = vmul.f32 %v1957_v12, %v494_v47 }
 0x54d   :  { %v2440_v29 = vsel %vm502_vm9, %v2433_v49, %v2366_v36 }
 0x54e   :  { %v607_v51 = vpack.c.bf16 %v2440_v29, %v2440_v29 }
 0x550   :  { %609 = vrot.lane.b32.xlu1 %v607_v51, %s2168_s1 }
 0x563   :  { %v574_v55 = vpop.permute.xlu0 %573 }
 0x564   :  { %v2447_v57 = vmul.f32 %v1961_v17, %v574_v55 }
 0x566   :  { %v2454_v59 = vsel %vm582_vm10, %v2447_v57, %v2379_v43 }
 0x567   :  { %v689_v36 = vpack.c.bf16 %v2454_v59, %v2454_v59 }
 0x569   :  { %691 = vrot.lane.b32.xlu0 %v689_v36, %s2168_s1 }
 0x5c2   :  { %v610_v60 = vpop.permute.xlu1 %609 }
 0x5c3   :  { %1820 = vmatmul.mubr.msk.bf16.vlgmr.msra.gmra.mrb[16].mxu0 %vm242_vm6, %v610_v60  ;;  %v2498_v60 = vsel %vm582_vm10, %v2427_v21, %v2424_v32 }
 0x5c4   :  { %1832 = vmatpush3.bf16.msra.mxu0 %v2266_v3  ;;  %1835 = vmatprep.mubr.msk.bf16.mxu0 %vm2167_vm0, %v2165_v0 }
 0x5c5   :  { %1833 = vmatprep.subr.bf16.mxu0 %v2165_v0 }
 0x5c8   :  { %1834 = vmatpush3.bf16.msra.mxu0 %v2273_v6 }
 0x5c9   :  { %1847 = vmatprep.subr.bf16.mxu0 %v2165_v0 }
 0x5db   :  { %v692_v43 = vpop.permute.xlu0 %691 }
 0x5dc   :  { %1828 = vmatmul.mubr.msk.bf16.vlgmr.msra.gmra.mrb[16].mxu1 %vm242_vm6, %v692_v43 }
 0x5dd   :  { %1840 = vmatpush3.bf16.msra.mxu1 %v2278_v7  ;;  %1843 = vmatprep.mubr.msk.bf16.mxu1 %vm2167_vm0, %v2165_v0 }
 0x5de   :  { %1841 = vmatprep.subr.bf16.mxu1 %v2165_v0 }
 0x5e1   :  { %1842 = vmatpush3.bf16.msra.mxu1 %v2286_v9 }
 0x5e2   :  { %1855 = vmatprep.subr.bf16.mxu1 %v2165_v0 }
 0x696   :  { %v648_v61 = vpop.f32.mrb[16].mxu0 }
 0x697   :  { %v654_v63 = vadd.f32 %v648_v61, %v2318_v33  ;;  %v1821_v2 = vpop.f32.mrb[17].mxu0 }
 0x698   :  { %v651_v4 = vpop.f32.mrb[18].mxu0 }
 0x699   :  { %1966 = vtanh.f32 %v654_v63  ;;  %v1822_v5 = vpop.f32.mrb[19].mxu0  ;;  %v1684_v56 = vmul.f32 -1.442695, %v654_v63 }
 0x6a3   :  { %v1967_v8 = vpop.eup %1966 }
 0x6a4   :  { %664 = vrot.lane.b32.xlu1 %v1967_v8, %s2162_s9 }
 0x6af   :  { %v730_v24 = vpop.f32.mrb[16].mxu1 }
 0x6b0   :  { %v736_v10 = vadd.f32 %v730_v24, %v2333_v52  ;;  %v1829_v11 = vpop.f32.mrb[17].mxu1  ;;  %v680_v52 = vsel %vm679_vm11, 1, %v2166_v1 }
 0x6b1   :  { %v733_v12 = vpop.f32.mrb[18].mxu1 }
 0x6b2   :  { %1968 = vtanh.f32 %v736_v10  ;;  %v1830_v13 = vpop.f32.mrb[19].mxu1  ;;  %v1686_v16 = vmul.f32 -1.442695, %v736_v10 }
 0x6b3   :  { %1970 = vpow2.f32 %v1684_v56 }
 0x6bc   :  { %v1969_v14 = vpop.eup %1968 }
 0x6bd   :  { %746 = vrot.lane.b32.xlu0 %v1969_v14, %s2162_s9  ;;  %v1971_v33 = vpop.eup %1970 }
 0x6be   :  { %v658_v15 = vadd.f32 1.0, %v1971_v33 }
 0x6c0   :  { %1972 = vrcp.f32 %v658_v15 }
 0x6c1   :  { %1974 = vpow2.f32 %v1686_v16 }
 0x6ca   :  { %v1973_v17 = vpop.eup %1972 }
 0x6cb   :  { %v1975_v20 = vpop.eup %1974  ;;  %v662_v47 = vmul.f32 %v1973_v17, %v2487_v42 }
 0x6cc   :  { %v740_v25 = vadd.f32 1.0, %v1975_v20 }
 0x6ce   :  { %1976 = vrcp.f32 %v740_v25 }
 0x6d8   :  { %v1977_v26 = vpop.eup %1976 }
 0x6d9   :  { %v744_v43 = vmul.f32 %v1977_v26, %v2498_v60 }
 0x716   :  { %v665_v18 = vpop.permute.xlu1 %664 }
 0x717   :  { %v667_v19 = vmul.f32 %v1973_v17, %v665_v18 }
 0x719   :  { %669 = vrot.lane.b32.xlu1 %v667_v19, %s2168_s1 }
 0x71d   :  { %682 = vperm.xlu1 %1922, %v680_v52  }
 0x72f   :  { %v747_v30 = vpop.permute.xlu0 %746 }
 0x730   :  { %v749_v34 = vmul.f32 %v1977_v26, %v747_v30 }
 0x732   :  { %751 = vrot.lane.b32.xlu0 %v749_v34, %s2168_s1 }
 0x736   :  { %764 = vperm.xlu0 %1921, %v762_v41  }
 0x78b   :  { %v670_v51 = vpop.permute.xlu1 %669 }
 0x78c   :  { %v2490_v55 = vadd.f32 %v670_v51, %v662_v47 }
 0x78e   :  { %1978 = vtanh.f32 %v2490_v55 }
 0x798   :  { %v1979_v36 = vpop.eup %1978 }
 0x799   :  { %675 = vrot.lane.b32.xlu1 %v1979_v36, %s2162_s9 }
 0x79c   :  { %v2505_v63 = vpop.permute.xlu1 %682 }
 0x79d   :  { %vm684_vm13 = vcmp.eq.s32.totalorder %v2505_v63, 1 }
 0x7a4   :  { %v752_v23 = vpop.permute.xlu0 %751 }
 0x7a5   :  { %v2501_v28 = vadd.f32 %v752_v23, %v744_v43 }
 0x7a7   :  { %1980 = vtanh.f32 %v2501_v28 }
 0x7b1   :  { %v1981_v61 = vpop.eup %1980 }
 0x7b2   :  { %757 = vrot.lane.b32.xlu0 %v1981_v61, %s2162_s9 }
 0x7b5   :  { %v2519_v5 = vpop.permute.xlu0 %764 }
 0x7b6   :  { %vm766_vm14 = vcmp.eq.s32.totalorder %v2519_v5, 1 }
 0x80b   :  { %v676_v2 = vpop.permute.xlu1 %675 }
 0x80c   :  { %v2507_v4 = vmul.f32 %v1973_v17, %v676_v2  ;;  %v946_v2 = vsel %vm945_vm1, 1, %v2166_v1 }
 0x80e   :  { %v2514_v32 = vsel %vm684_vm13, %v2507_v4, %v2440_v29 }
 0x80f   :  { %v791_v21 = vpack.c.bf16 %v2514_v32, %v2514_v32 }
 0x811   :  { %793 = vrot.lane.b32.xlu1 %v791_v21, %s2168_s1  ;;  %v2561_v21 = vsel %vm684_vm13, %v2490_v55, %v2487_v42 }
 0x824   :  { %v758_v8 = vpop.permute.xlu0 %757 }
 0x825   :  { %v2521_v24 = vmul.f32 %v1977_v26, %v758_v8 }
 0x827   :  { %v2528_v10 = vsel %vm766_vm14, %v2521_v24, %v2454_v59 }
 0x828   :  { %v873_v29 = vpack.c.bf16 %v2528_v10, %v2528_v10 }
 0x82a   :  { %875 = vrot.lane.b32.xlu0 %v873_v29, %s2168_s1 }
 0x883   :  { %v794_v11 = vpop.permute.xlu1 %793 }
 0x884   :  { %1836 = vmatmul.mubr.msk.bf16.vlgmr.msra.gmra.mrb[20].mxu0 %vm242_vm6, %v794_v11 }
 0x885   :  { %1848 = vmatpush3.bf16.msra.mxu0 %v2266_v3  ;;  %1851 = vmatprep.mubr.msk.bf16.mxu0 %vm2167_vm0, %v2165_v0 }
 0x886   :  { %1849 = vmatprep.subr.bf16.mxu0 %v2165_v0 }
 0x889   :  { %1850 = vmatpush3.bf16.msra.mxu0 %v2273_v6 }
 0x88a   :  { %1863 = vmatprep.subr.bf16.mxu0 %v2165_v0 }
 0x89c   :  { %v876_v59 = vpop.permute.xlu0 %875 }
 0x89d   :  { %1844 = vmatmul.mubr.msk.bf16.vlgmr.msra.gmra.mrb[20].mxu1 %vm242_vm6, %v876_v59 }
 0x89e   :  { %1856 = vmatpush3.bf16.msra.mxu1 %v2278_v7  ;;  %1859 = vmatprep.mubr.msk.bf16.mxu1 %vm2167_vm0, %v2165_v0 }
 0x89f   :  { %1857 = vmatprep.subr.bf16.mxu1 %v2165_v0 }
 0x8a2   :  { %1858 = vmatpush3.bf16.msra.mxu1 %v2286_v9 }
 0x8a3   :  { %1871 = vmatprep.subr.bf16.mxu1 %v2165_v0 }
 0x957   :  { %v832_v12 = vpop.f32.mrb[20].mxu0 }
 0x958   :  { %v838_v13 = vadd.f32 %v832_v12, %v2322_v37  ;;  %v1837_v14 = vpop.f32.mrb[21].mxu0 }
 0x959   :  { %v835_v56 = vpop.f32.mrb[22].mxu0 }
 0x95a   :  { %1982 = vtanh.f32 %v838_v13  ;;  %v1838_v33 = vpop.f32.mrb[23].mxu0  ;;  %v1690_v25 = vmul.f32 -1.442695, %v838_v13 }
 0x964   :  { %v1983_v15 = vpop.eup %1982 }
 0x965   :  { %848 = vrot.lane.b32.xlu1 %v1983_v15, %s2162_s9 }
 0x970   :  { %v914_v16 = vpop.f32.mrb[20].mxu1 }
 0x971   :  { %v920_v17 = vadd.f32 %v914_v16, %v2329_v48  ;;  %v1845_v18 = vpop.f32.mrb[21].mxu1  ;;  %v864_v48 = vsel %vm863_vm15, 1, %v2166_v1  ;;  %v2572_v1 = vsel %vm766_vm14, %v2501_v28, %v2498_v60 }
 0x972   :  { %v917_v19 = vpop.f32.mrb[22].mxu1 }
 0x973   :  { %1984 = vtanh.f32 %v920_v17  ;;  %v1846_v52 = vpop.f32.mrb[23].mxu1  ;;  %v1692_v30 = vmul.f32 -1.442695, %v920_v17 }
 0x974   :  { %1986 = vpow2.f32 %v1690_v25 }
 0x97d   :  { %v1985_v20 = vpop.eup %1984 }
 0x97e   :  { %930 = vrot.lane.b32.xlu0 %v1985_v20, %s2162_s9  ;;  %v1987_v37 = vpop.eup %1986 }
 0x97f   :  { %v842_v26 = vadd.f32 1.0, %v1987_v37 }
 0x981   :  { %1988 = vrcp.f32 %v842_v26 }
 0x982   :  { %1990 = vpow2.f32 %v1692_v30 }
 0x98b   :  { %v1989_v34 = vpop.eup %1988 }
 0x98c   :  { %v1991_v51 = vpop.eup %1990  ;;  %v846_v8 = vmul.f32 %v1989_v34, %v2561_v21 }
 0x98d   :  { %v924_v36 = vadd.f32 1.0, %v1991_v51 }
 0x98f   :  { %1992 = vrcp.f32 %v924_v36 }
 0x999   :  { %v1993_v43 = vpop.eup %1992 }
 0x99a   :  { %v928_v62 = vmul.f32 %v1993_v43, %v2572_v1 }
 0x9d7   :  { %v849_v41 = vpop.permute.xlu1 %848 }
 0x9d8   :  { %v851_v47 = vmul.f32 %v1989_v34, %v849_v41 }
 0x9da   :  { %853 = vrot.lane.b32.xlu1 %v851_v47, %s2168_s1 }
 0x9de   :  { %866 = vperm.xlu1 %1922, %v864_v48  }
 0x9f0   :  { %v931_v23 = vpop.permute.xlu0 %930 }
 0x9f1   :  { %v933_v61 = vmul.f32 %v1993_v43, %v931_v23 }
 0x9f3   :  { %935 = vrot.lane.b32.xlu0 %v933_v61, %s2168_s1 }
 0x9f7   :  { %948 = vperm.xlu0 %1921, %v946_v2  }
 0xa4c   :  { %v854_v29 = vpop.permute.xlu1 %853 }
 0xa4d   :  { %v2564_v11 = vadd.f32 %v854_v29, %v846_v8 }
 0xa4f   :  { %1994 = vtanh.f32 %v2564_v11 }
 0xa59   :  { %v1995_v59 = vpop.eup %1994 }
 0xa5a   :  { %859 = vrot.lane.b32.xlu1 %v1995_v59, %s2162_s9 }
 0xa5d   :  { %v2579_v13 = vpop.permute.xlu1 %866 }
 0xa5e   :  { %vm868_vm2 = vcmp.eq.s32.totalorder %v2579_v13, 1 }
 0xa65   :  { %v936_v42 = vpop.permute.xlu0 %935 }
 0xa66   :  { %v2575_v55 = vadd.f32 %v936_v42, %v928_v62 }
 0xa68   :  { %1996 = vtanh.f32 %v2575_v55 }
 0xa72   :  { %v1997_v12 = vpop.eup %1996 }
 0xa73   :  { %941 = vrot.lane.b32.xlu0 %v1997_v12, %s2162_s9  ;;  %v2631_v12 = vsel %vm868_vm2, %v2564_v11, %v2561_v21 }
 0xa76   :  { %v2593_v33 = vpop.permute.xlu0 %948 }
 0xa77   :  { %vm950_vm3 = vcmp.eq.s32.totalorder %v2593_v33, 1 }
 0xacc   :  { %v860_v14 = vpop.permute.xlu1 %859 }
 0xacd   :  { %v2581_v56 = vmul.f32 %v1989_v34, %v860_v14 }
 0xacf   :  { %v2588_v60 = vsel %vm868_vm2, %v2581_v56, %v2514_v32 }
 0xad0   :  { %v974_v28 = vpack.c.bf16 %v2588_v60, %v2588_v60 }
 0xad2   :  { %976 = vrot.lane.b32.xlu1 %v974_v28, %s2168_s1 }
 0xae5   :  { %v942_v15 = vpop.permute.xlu0 %941 }
 0xae6   :  { %v2595_v16 = vmul.f32 %v1993_v43, %v942_v15 }
 0xae8   :  { %v2602_v17 = vsel %vm950_vm3, %v2595_v16, %v2528_v10 }
 0xae9   :  { %v1049_v32 = vpack.c.bf16 %v2602_v17, %v2602_v17 }
 0xaeb   :  { %1051 = vrot.lane.b32.xlu0 %v1049_v32, %s2168_s1 }
 0xb44   :  { %v977_v18 = vpop.permute.xlu1 %976 }
 0xb45   :  { %1852 = vmatmul.mubr.msk.bf16.vlgmr.msra.gmra.mrb[24].mxu0 %vm242_vm6, %v977_v18  ;;  %v2642_v18 = vsel %vm950_vm3, %v2575_v55, %v2572_v1 }
 0xb46   :  { %1864 = vmatpush3.bf16.msra.mxu0 %v2266_v3  ;;  %1867 = vmatprep.mubr.msk.bf16.mxu0 %vm2167_vm0, %v2165_v0 }
 0xb47   :  { %1865 = vmatprep.subr.bf16.mxu0 %v2165_v0 }
 0xb4a   :  { %1866 = vmatpush3.bf16.msra.mxu0 %v2273_v6 }
 0xb4b   :  { %1879 = vmatprep.subr.bf16.mxu0 %v2165_v0 }
 0xb5d   :  { %v1052_v10 = vpop.permute.xlu0 %1051 }
 0xb5e   :  { %1860 = vmatmul.mubr.msk.bf16.vlgmr.msra.gmra.mrb[24].mxu1 %vm242_vm6, %v1052_v10 }
 0xb5f   :  { %1872 = vmatpush3.bf16.msra.mxu1 %v2278_v7  ;;  %1875 = vmatprep.mubr.msk.bf16.mxu1 %vm2167_vm0, %v2165_v0 }
 0xb60   :  { %1873 = vmatprep.subr.bf16.mxu1 %v2165_v0 }
 0xb63   :  { %1874 = vmatpush3.bf16.msra.mxu1 %v2286_v9 }
 0xb64   :  { %1887 = vmatprep.subr.bf16.mxu1 %v2165_v0 }
 0xc18   :  { %v1015_v19 = vpop.f32.mrb[24].mxu0 }
 0xc19   :  { %v1021_v52 = vadd.f32 %v1015_v19, %v2326_v46  ;;  %v1853_v20 = vpop.f32.mrb[25].mxu0 }
 0xc1a   :  { %v1018_v25 = vpop.f32.mrb[26].mxu0 }
 0xc1b   :  { %1998 = vtanh.f32 %v1021_v52  ;;  %v1854_v37 = vpop.f32.mrb[27].mxu0  ;;  %v1696_v36 = vmul.f32 -1.442695, %v1021_v52 }
 0xc25   :  { %v1999_v26 = vpop.eup %1998 }
 0xc26   :  { %1031 = vrot.lane.b32.xlu1 %v1999_v26, %s2162_s9 }
 0xc31   :  { %v1090_v30 = vpop.f32.mrb[24].mxu1 }
 0xc32   :  { %v1096_v34 = vadd.f32 %v1090_v30, %v2324_v40  ;;  %v1861_v41 = vpop.f32.mrb[25].mxu1 }
 0xc33   :  { %v1093_v47 = vpop.f32.mrb[26].mxu1 }
 0xc34   :  { %2000 = vtanh.f32 %v1096_v34  ;;  %v1862_v48 = vpop.f32.mrb[27].mxu1  ;;  %v1698_v23 = vmul.f32 -1.442695, %v1096_v34 }
 0xc35   :  { %2002 = vpow2.f32 %v1696_v36 }
 0xc3e   :  { %v2001_v51 = vpop.eup %2000 }
 0xc3f   :  { %1106 = vrot.lane.b32.xlu0 %v2001_v51, %s2162_s9  ;;  %v2003_v46 = vpop.eup %2002 }
 0xc40   :  { %v1025_v43 = vadd.f32 1.0, %v2003_v46 }
 0xc42   :  { %2004 = vrcp.f32 %v1025_v43 }
 0xc43   :  { %2006 = vpow2.f32 %v1698_v23 }
 0xc4c   :  { %v2005_v61 = vpop.eup %2004 }
 0xc4d   :  { %v2007_v40 = vpop.eup %2006  ;;  %v1029_v14 = vmul.f32 %v2005_v61, %v2631_v12 }
 0xc4e   :  { %v1100_v29 = vadd.f32 1.0, %v2007_v40 }
 0xc50   :  { %2008 = vrcp.f32 %v1100_v29 }
 0xc5a   :  { %v2009_v59 = vpop.eup %2008 }
 0xc5b   :  { %v1104_v10 = vmul.f32 %v2009_v59, %v2642_v18 }
 0xc98   :  { %v1032_v2 = vpop.permute.xlu1 %1031 }
 0xc99   :  { %v1034_v8 = vmul.f32 %v2005_v61, %v1032_v2 }
 0xc9b   :  { %1036 = vrot.lane.b32.xlu1 %v1034_v8, %s2168_s1 }
 0xcb1   :  { %v1107_v62 = vpop.permute.xlu0 %1106 }
 0xcb2   :  { %v1109_v42 = vmul.f32 %v2009_v59, %v1107_v62 }
 0xcb4   :  { %1111 = vrot.lane.b32.xlu0 %v1109_v42, %s2168_s1 }
 0xd0d   :  { %v1037_v28 = vpop.permute.xlu1 %1036 }
 0xd0e   :  { %v2634_v15 = vadd.f32 %v1037_v28, %v1029_v14 }
 0xd10   :  { %2010 = vtanh.f32 %v2634_v15  ;;  %v2695_v28 = vsel %vm950_vm3, %v2634_v15, %v2631_v12 }
 0xd1a   :  { %v2011_v32 = vpop.eup %2010 }
 0xd1b   :  { %1042 = vrot.lane.b32.xlu1 %v2011_v32, %s2162_s9 }
 0xd26   :  { %v1112_v21 = vpop.permute.xlu0 %1111 }
 0xd27   :  { %v2645_v11 = vadd.f32 %v1112_v21, %v1104_v10 }
 0xd29   :  { %2012 = vtanh.f32 %v2645_v11 }
 0xd33   :  { %v2013_v19 = vpop.eup %2012 }
 0xd34   :  { %1117 = vrot.lane.b32.xlu0 %v2013_v19, %s2162_s9 }
 0xd8d   :  { %v1043_v52 = vpop.permute.xlu1 %1042 }
 0xd8e   :  { %v2649_v20 = vmul.f32 %v2005_v61, %v1043_v52  ;;  %v2706_v52 = vsel %vm868_vm2, %v2645_v11, %v2642_v18 }
 0xd90   :  { %v2655_v25 = vsel %vm950_vm3, %v2649_v20, %v2588_v60 }
 0xd91   :  { %v1142_v1 = vpack.c.bf16 %v2655_v25, %v2655_v25 }
 0xd93   :  { %1144 = vrot.lane.b32.xlu1 %v1142_v1, %s2168_s1 }
 0xda6   :  { %v1118_v55 = vpop.permute.xlu0 %1117 }
 0xda7   :  { %v2660_v37 = vmul.f32 %v2009_v59, %v1118_v55 }
 0xda9   :  { %v2666_v26 = vsel %vm868_vm2, %v2660_v37, %v2602_v17  ;;  %v1132_v53 = vsel %vm868_vm2, %v2660_v37, 0.0 }
 0xdaa   :  { %v1217_v30 = vpack.c.bf16 %v2666_v26, %v2666_v26 }
 0xdac   :  { %1219 = vrot.lane.b32.xlu0 %v1217_v30, %s2168_s1 }
 0xe05   :  { %v1145_v60 = vpop.permute.xlu1 %1144 }
 0xe06   :  { %1868 = vmatmul.mubr.msk.bf16.vlgmr.msra.gmra.mrb[28].mxu0 %vm242_vm6, %v1145_v60 }
 0xe07   :  { %1880 = vmatpush3.bf16.msra.mxu0 %v2266_v3  ;;  %1883 = vmatprep.mubr.msk.bf16.mxu0 %vm2167_vm0, %v2165_v0 }
 0xe08   :  { %1881 = vmatprep.subr.bf16.mxu0 %v2165_v0 }
 0xe0b   :  { %1882 = vmatpush3.bf16.msra.mxu0 %v2273_v6 }
 0xe0c   :  { %1895 = vmatprep.subr.bf16.mxu0 %v2165_v0 }
 0xe1e   :  { %v1220_v17 = vpop.permute.xlu0 %1219 }
 0xe1f   :  { %1876 = vmatmul.mubr.msk.bf16.vlgmr.msra.gmra.mrb[28].mxu1 %vm242_vm6, %v1220_v17 }
 0xe20   :  { %1888 = vmatpush3.bf16.msra.mxu1 %v2278_v7  ;;  %1891 = vmatprep.mubr.msk.bf16.mxu1 %vm2167_vm0, %v2165_v0 }
 0xe21   :  { %1889 = vmatprep.subr.bf16.mxu1 %v2165_v0 }
 0xe24   :  { %1890 = vmatpush3.bf16.msra.mxu1 %v2286_v9 }
 0xe25   :  { %1903 = vmatprep.subr.bf16.mxu1 %v2165_v0 }
 0xed9   :  { %v1183_v3 = vpop.f32.mrb[28].mxu0 }
 0xeda   :  { %v1189_v34 = vadd.f32 %v1183_v3, %v2331_v50  ;;  %v1869_v6 = vpop.f32.mrb[29].mxu0 }
 0xedb   :  { %v1186_v41 = vpop.f32.mrb[30].mxu0 }
 0xedc   :  { %2014 = vtanh.f32 %v1189_v34  ;;  %v1870_v47 = vpop.f32.mrb[31].mxu0  ;;  %v1702_v23 = vmul.f32 -1.442695, %v1189_v34  ;;  %v2062_v41 = vld [vmem:[#allocation6] sm:$0xff]  }
 0xedd   :  { %v2063_v47 = vld [vmem:[#allocation6 + $0x8] sm:$0xff]  }
 0xee6   :  { %v2015_v48 = vpop.eup %2014 }
 0xee7   :  { %1199 = vrot.lane.b32.xlu1 %v2015_v48, %s2162_s9 }
 0xef2   :  { %v1258_v7 = vpop.f32.mrb[28].mxu1 }
 0xef3   :  { %v1264_v51 = vadd.f32 %v1258_v7, %v2320_v35  ;;  %v1877_v36 = vpop.f32.mrb[29].mxu1  ;;  %v2065_v7 = vld [vmem:[#allocation8 + $0x8] sm:$0xff]  }
 0xef4   :  { %v1261_v46 = vpop.f32.mrb[30].mxu1 }
 0xef5   :  { %2016 = vtanh.f32 %v1264_v51  ;;  %v1878_v43 = vpop.f32.mrb[31].mxu1  ;;  %v1704_v2 = vmul.f32 -1.442695, %v1264_v51 }
 0xef6   :  { %2018 = vpow2.f32 %v1702_v23 }
 0xeff   :  { %v2017_v9 = vpop.eup %2016 }
 0xf00   :  { %1274 = vrot.lane.b32.xlu0 %v2017_v9, %s2162_s9  ;;  %v2019_v50 = vpop.eup %2018 }
 0xf01   :  { %v1193_v61 = vadd.f32 1.0, %v2019_v50 }
 0xf03   :  { %2020 = vrcp.f32 %v1193_v61 }
 0xf04   :  { %2022 = vpow2.f32 %v1704_v2 }
 0xf0d   :  { %v2021_v8 = vpop.eup %2020 }
 0xf0e   :  { %v2023_v35 = vpop.eup %2022  ;;  %v1197_v32 = vmul.f32 %v2021_v8, %v2695_v28 }
 0xf0f   :  { %v1268_v59 = vadd.f32 1.0, %v2023_v35 }
 0xf11   :  { %2024 = vrcp.f32 %v1268_v59 }
 0xf1b   :  { %v2025_v62 = vpop.eup %2024 }
 0xf1c   :  { %v1272_v1 = vmul.f32 %v2025_v62, %v2706_v52 }
 0xf59   :  { %v1200_v40 = vpop.permute.xlu1 %1199 }
 0xf5a   :  { %v1202_v29 = vmul.f32 %v2021_v8, %v1200_v40 }
 0xf5c   :  { %1204 = vrot.lane.b32.xlu1 %v1202_v29, %s2168_s1 }
 0xf72   :  { %v1275_v42 = vpop.permute.xlu0 %1274 }
 0xf73   :  { %v1277_v14 = vmul.f32 %v2025_v62, %v1275_v42 }
 0xf75   :  { %1279 = vrot.lane.b32.xlu0 %v1277_v14, %s2168_s1 }
 0xfce   :  { %v1205_v10 = vpop.permute.xlu1 %1204 }
 0xfcf   :  { %v2698_v21 = vadd.f32 %v1205_v10, %v1197_v32 }
 0xfd1   :  { %2026 = vtanh.f32 %v2698_v21 }
 0xfdb   :  { %v2027_v19 = vpop.eup %2026 }
 0xfdc   :  { %1210 = vrot.lane.b32.xlu1 %v2027_v19, %s2162_s9 }
 0xfe7   :  { %v1280_v12 = vpop.permute.xlu0 %1279 }
 0xfe8   :  { %v2709_v15 = vadd.f32 %v1280_v12, %v1272_v1  ;;  %v2753_v12 = vsel %vm766_vm14, %v2698_v21, %v2695_v28 }
 0xfea   :  { %2028 = vtanh.f32 %v2709_v15 }
 0xff4   :  { %v2029_v55 = vpop.eup %2028 }
 0xff5   :  { %1285 = vrot.lane.b32.xlu0 %v2029_v55, %s2162_s9 }
0x104e   :  { %v1211_v30 = vpop.permute.xlu1 %1210 }
0x104f   :  { %v2713_v60 = vmul.f32 %v2021_v8, %v1211_v30 }
0x1051   :  { %v2719_v17 = vsel %vm766_vm14, %v2713_v60, %v2655_v25 }
0x1052   :  { %v1310_v18 = vpack.c.bf16 %v2719_v17, %v2719_v17 }
0x1054   :  { %1312 = vrot.lane.b32.xlu1 %v1310_v18, %s2168_s1 }
0x1067   :  { %v1286_v11 = vpop.permute.xlu0 %1285 }
0x1068   :  { %v2724_v3 = vmul.f32 %v2025_v62, %v1286_v11 }
0x106a   :  { %v2730_v34 = vsel %vm684_vm13, %v2724_v3, %v2666_v26  ;;  %v2064_v26 = vld [vmem:[#allocation8] sm:$0xff]  }
0x106b   :  { %v1385_v6 = vpack.c.bf16 %v2730_v34, %v2730_v34 }
0x106d   :  { %1387 = vrot.lane.b32.xlu0 %v1385_v6, %s2168_s1  ;;  %v2761_v6 = vsel %vm684_vm13, %v2709_v15, %v2706_v52 }
0x10c6   :  { %v1313_v25 = vpop.permute.xlu1 %1312 }
0x10c7   :  { %1884 = vmatmul.mubr.msk.bf16.vlgmr.msra.gmra.mrb[32].mxu0 %vm242_vm6, %v1313_v25 }
0x10c8   :  { %1896 = vmatpush3.bf16.msra.mxu0 %v2062_v41  ;;  %1899 = vmatprep.mubr.msk.bf16.mxu0 %vm2167_vm0, %v2165_v0 }
0x10c9   :  { %1897 = vmatprep.subr.bf16.mxu0 %v2165_v0 }
0x10cc   :  { %1898 = vmatpush3.bf16.msra.mxu0 %v2063_v47 }
0x10df   :  { %v1388_v48 = vpop.permute.xlu0 %1387 }
0x10e0   :  { %1892 = vmatmul.mubr.msk.bf16.vlgmr.msra.gmra.mrb[32].mxu1 %vm242_vm6, %v1388_v48 }
0x10e1   :  { %1904 = vmatpush3.bf16.msra.mxu1 %v2064_v26  ;;  %1907 = vmatprep.mubr.msk.bf16.mxu1 %vm2167_vm0, %v2165_v0  ;;  %vm413_vm0 = vcmask 257024  }
0x10e2   :  { %1905 = vmatprep.subr.bf16.mxu1 %v2165_v0 }
0x10e5   :  { %1906 = vmatpush3.bf16.msra.mxu1 %v2065_v7 }
0x119a   :  { %v1351_v51 = vpop.f32.mrb[32].mxu0 }
0x119b   :  { %v1357_v36 = vadd.f32 %v1351_v51, %v2335_v54  ;;  %v1885_v46 = vpop.f32.mrb[33].mxu0 }
0x119c   :  { %v1354_v43 = vpop.f32.mrb[34].mxu0 }
0x119d   :  { %2030 = vtanh.f32 %v1357_v36  ;;  %v1886_v9 = vpop.f32.mrb[35].mxu0  ;;  %v1708_v29 = vmul.f32 -1.442695, %v1357_v36 }
0x11a7   :  { %v2031_v23 = vpop.eup %2030 }
0x11a8   :  { %1367 = vrot.lane.b32.xlu1 %v2031_v23, %s2162_s9 }
0x11b3   :  { %v1426_v50 = vpop.f32.mrb[32].mxu1 }
0x11b4   :  { %v1432_v61 = vadd.f32 %v1426_v50, %v2316_v27  ;;  %v1893_v2 = vpop.f32.mrb[33].mxu1 }
0x11b5   :  { %v1429_v8 = vpop.f32.mrb[34].mxu1 }
0x11b6   :  { %2032 = vtanh.f32 %v1432_v61  ;;  %v1894_v40 = vpop.f32.mrb[35].mxu1  ;;  %v1710_v59 = vmul.f32 -1.442695, %v1432_v61 }
0x11b7   :  { %2034 = vpow2.f32 %v1708_v29 }
0x11c0   :  { %v2033_v0 = vpop.eup %2032 }
0x11c1   :  { %1442 = vrot.lane.b32.xlu0 %v2033_v0, %s2162_s9  ;;  %v2035_v54 = vpop.eup %2034 }
0x11c2   :  { %v1361_v35 = vadd.f32 1.0, %v2035_v54 }
0x11c4   :  { %2036 = vrcp.f32 %v1361_v35 }
0x11c5   :  { %2038 = vpow2.f32 %v1710_v59 }
0x11ce   :  { %v2037_v62 = vpop.eup %2036 }
0x11cf   :  { %v2039_v27 = vpop.eup %2038  ;;  %v1365_v55 = vmul.f32 %v2037_v62, %v2753_v12 }
0x11d0   :  { %v1436_v32 = vadd.f32 1.0, %v2039_v27 }
0x11d2   :  { %2040 = vrcp.f32 %v1436_v32 }
0x11dc   :  { %v2041_v10 = vpop.eup %2040 }
0x11dd   :  { %v1440_v25 = vmul.f32 %v2041_v10, %v2761_v6 }
0x121a   :  { %v1368_v42 = vpop.permute.xlu1 %1367 }
0x121b   :  { %v1370_v14 = vmul.f32 %v2037_v62, %v1368_v42 }
0x121d   :  { %1372 = vrot.lane.b32.xlu1 %v1370_v14, %s2168_s1 }
0x1233   :  { %v1443_v19 = vpop.permute.xlu0 %1442 }
0x1234   :  { %v1445_v1 = vmul.f32 %v2041_v10, %v1443_v19 }
0x1236   :  { %1447 = vrot.lane.b32.xlu0 %v1445_v1, %s2168_s1 }
0x128f   :  { %v1373_v30 = vpop.permute.xlu1 %1372 }
0x1290   :  { %v1375_v18 = vadd.f32 %v1373_v30, %v1365_v55 }
0x1292   :  { %2042 = vtanh.f32 %v1375_v18  ;;  %v1383_v55 = vsel %vm582_vm10, %v1375_v18, %v2753_v12  ;;  %v769_v12 = vsel %vm684_vm13, %v2507_v4, 0.0  ;;  %v1123_v4 = vsel %vm950_vm3, %v2649_v20, 0.0 }
0x1293   :  { %v1723_v18 = vpack.c.bf16 %v769_v12, %v769_v12  ;;  %v595_v20 = vsel %vm582_vm10, %v2447_v57, 0.0  ;;  %v1300_v57 = vsel %vm684_vm13, %v2724_v3, 0.0 }
0x1294   :  { %v1730_v5 = vpack.c.bf16 %v1300_v57, %v1300_v57 }
0x129c   :  { %v2043_v11 = vpop.eup %2042 }
0x129d   :  { %1378 = vrot.lane.b32.xlu1 %v2043_v11, %s2162_s9 }
0x12a8   :  { %v1448_v41 = vpop.permute.xlu0 %1447 }
0x12a9   :  { %v2764_v47 = vadd.f32 %v1448_v41, %v1440_v25 }
0x12ab   :  { %2044 = vtanh.f32 %v2764_v47 }
0x12b5   :  { %v2045_v28 = vpop.eup %2044 }
0x12b6   :  { %1453 = vrot.lane.b32.xlu0 %v2045_v28, %s2162_s9  ;;  %v585_v28 = vsel %vm502_vm9, %v2433_v49, 0.0  ;;  %v953_v49 = vsel %vm868_vm2, %v2581_v56, 0.0 }
0x130f   :  { %v1379_v21 = vpop.permute.xlu1 %1378 }
0x1310   :  { %v2768_v48 = vmul.f32 %v2037_v62, %v1379_v21  ;;  %v1721_v21 = vpack.c.bf16 %v585_v28, %v585_v28 }
0x1312   :  { %v1382_v26 = vsel %vm582_vm10, %v2768_v48, %v2719_v17 }
0x1313   :  { %v1478_v52 = vpack.c.bf16 %v1382_v26, %v1382_v26  ;;  %v1458_v26 = vsel %vm502_vm9, %v2764_v47, %v2761_v6  ;;  %v1291_v6 = vsel %vm766_vm14, %v2713_v60, 0.0  ;;  %v1459_v47 = vsel %vm582_vm10, %v2768_v48, 0.0 }
0x1314   :  { %v1729_v56 = vpack.c.bf16 %v1291_v6, %v1291_v6  ;;  %v1722_v60 = vpack.c.bf16 %v595_v20, %v595_v20  ;;  %v779_v48 = vsel %vm766_vm14, %v2521_v24, 0.0 }
0x1315   :  { %1480 = vrot.lane.b32.xlu1 %v1478_v52, %s2168_s1 }
0x1328   :  { %v1454_v15 = vpop.permute.xlu0 %1453 }
0x1329   :  { %v2775_v7 = vmul.f32 %v2041_v10, %v1454_v15 }
0x132b   :  { %v1457_v51 = vsel %vm502_vm9, %v2775_v7, %v2730_v34  ;;  %v1468_v24 = vsel %vm502_vm9, %v2775_v7, 0.0 }
0x132c   :  { %v1551_v36 = vpack.c.bf16 %v1457_v51, %v1457_v51  ;;  %v1725_v51 = vpack.c.bf16 %v953_v49, %v953_v49  ;;  %v1732_v33 = vpack.c.bf16 %v1468_v24, %v1468_v24 }
0x132e   :  { %1553 = vrot.lane.b32.xlu0 %v1551_v36, %s2168_s1  ;;  %v1727_v36 = vpack.c.bf16 %v1123_v4, %v1123_v4 }
0x1387   :  { %v1481_v46 = vpop.permute.xlu1 %1480 }
0x1388   :  { %1900 = vmatmul.mubr.msk.bf16.vlgmr.msra.gmra.mrb[36].mxu0 %vm242_vm6, %v1481_v46 }
0x13a0   :  { %v1554_v43 = vpop.permute.xlu0 %1553 }
0x13a1   :  { %1908 = vmatmul.mubr.msk.bf16.vlgmr.msra.gmra.mrb[36].mxu1 %vm242_vm6, %v1554_v43  ;;  %v1731_v43 = vpack.c.bf16 %v1459_v47, %v1459_v47 }
0x145b   :  { %v1519_v17 = vpop.f32.mrb[36].mxu0 }
0x145c   :  { %v1525_v9 = vadd.f32 %v1519_v17, %v2339_v58  ;;  %v1901_v23 = vpop.f32.mrb[37].mxu0  ;;  %v1724_v17 = vpack.c.bf16 %v779_v48, %v779_v48 }
0x145d   :  { %v1522_v50 = vpop.f32.mrb[38].mxu0 }
0x145e   :  { %2046 = vtanh.f32 %v1525_v9  ;;  %v1902_v61 = vpop.f32.mrb[39].mxu0  ;;  %v1714_v35 = vmul.f32 -1.442695, %v1525_v9  ;;  %v963_v9 = vsel %vm950_vm3, %v2595_v16, 0.0 }
0x145f   :  { %v1726_v23 = vpack.c.bf16 %v963_v9, %v963_v9 }
0x1468   :  { %v2047_v2 = vpop.eup %2046 }
0x1469   :  { %1535 = vrot.lane.b32.xlu1 %v2047_v2, %s2162_s9 }
0x1474   :  { %v1592_v34 = vpop.f32.mrb[36].mxu1 }
0x1475   :  { %v1598_v8 = vadd.f32 %v1592_v34, %v2312_v22  ;;  %v1909_v40 = vpop.f32.mrb[37].mxu1 }
0x1476   :  { %v1595_v0 = vpop.f32.mrb[38].mxu1 }
0x1477   :  { %2048 = vtanh.f32 %v1598_v8  ;;  %v1910_v29 = vpop.f32.mrb[39].mxu1  ;;  %v1716_v62 = vmul.f32 -1.442695, %v1598_v8 }
0x1478   :  { %2050 = vpow2.f32 %v1714_v35 }
0x1481   :  { %v2049_v54 = vpop.eup %2048 }
0x1482   :  { %1608 = vrot.lane.b32.xlu0 %v2049_v54, %s2162_s9  ;;  %v2051_v58 = vpop.eup %2050 }
0x1483   :  { %v1529_v59 = vadd.f32 1.0, %v2051_v58 }
0x1485   :  { %2052 = vrcp.f32 %v1529_v59 }
0x1486   :  { %2054 = vpow2.f32 %v1716_v62 }
0x148f   :  { %v2788_v42 = vpop.eup %2052 }
0x1490   :  { %v2055_v22 = vpop.eup %2054  ;;  %v1533_v30 = vmul.f32 %v2788_v42, %v1383_v55 }
0x1491   :  { %v1602_v32 = vadd.f32 1.0, %v2055_v22 }
0x1493   :  { %2056 = vrcp.f32 %v1602_v32 }
0x149d   :  { %v2792_v10 = vpop.eup %2056 }
0x149e   :  { %v1606_v52 = vmul.f32 %v2792_v10, %v1458_v26 }
0x14db   :  { %v1536_v14 = vpop.permute.xlu1 %1535 }
0x14dc   :  { %v1538_v27 = vmul.f32 %v2788_v42, %v1536_v14 }
0x14de   :  { %1540 = vrot.lane.b32.xlu1 %v1538_v27, %s2168_s1 }
0x14f4   :  { %v1609_v19 = vpop.permute.xlu0 %1608 }
0x14f5   :  { %v1611_v1 = vmul.f32 %v2792_v10, %v1609_v19 }
0x14f7   :  { %1613 = vrot.lane.b32.xlu0 %v1611_v1, %s2168_s1 }
0x1550   :  { %v1541_v11 = vpop.permute.xlu1 %1540 }
0x1551   :  { %v1543_v25 = vadd.f32 %v1541_v11, %v1533_v30 }
0x1553   :  { %2058 = vtanh.f32 %v1543_v25 }
0x155d   :  { %v2059_v41 = vpop.eup %2058 }
0x155e   :  { %1546 = vrot.lane.b32.xlu1 %v2059_v41, %s2162_s9 }
0x1562   :  { %410 = vrot.lane.b32.xlu1 %v2370_v38, %s2168_s1 }
0x1566   :  { %590 = vrot.lane.b32.xlu1 %v1721_v21, %s2168_s1 }
0x1569   :  { %v1614_v38 = vpop.permute.xlu0 %1613 }
0x156a   :  { %774 = vrot.lane.b32.xlu1 %v1723_v18, %s2168_s1  ;;  %v1616_v15 = vadd.f32 %v1614_v38, %v1606_v52 }
0x156c   :  { %2060 = vtanh.f32 %v1616_v15 }
0x156e   :  { %958 = vrot.lane.b32.xlu1 %v1725_v51, %s2168_s1 }
0x1572   :  { %1128 = vrot.lane.b32.xlu1 %v1727_v36, %s2168_s1 }
0x1576   :  { %1296 = vrot.lane.b32.xlu1 %v1729_v56, %s2168_s1  ;;  %v2061_v46 = vpop.eup %2060 }
0x1577   :  { %1619 = vrot.lane.b32.xlu0 %v2061_v46, %s2162_s9 }
0x157a   :  { %1464 = vrot.lane.b32.xlu1 %v1731_v43, %s2168_s1 }
0x157b   :  { %419 = vrot.lane.b32.xlu0 %v2383_v44, %s2162_s9  ;;  %v1728_v44 = vpack.c.bf16 %v1132_v53, %v1132_v53 }
0x157f   :  { %600 = vrot.lane.b32.xlu0 %v1722_v60, %s2162_s9 }
0x1583   :  { %784 = vrot.lane.b32.xlu0 %v1724_v17, %s2162_s9 }
0x1587   :  { %968 = vrot.lane.b32.xlu0 %v1726_v23, %s2162_s9 }
0x158b   :  { %1137 = vrot.lane.b32.xlu0 %v1728_v44, %s2162_s9 }
0x158f   :  { %1305 = vrot.lane.b32.xlu0 %v1730_v5, %s2162_s9 }
0x1593   :  { %1473 = vrot.lane.b32.xlu0 %v1732_v33, %s2162_s9 }
0x15d0   :  { %v1547_v13 = vpop.permute.xlu1 %1546 }
0x15d1   :  { %v1549_v16 = vmul.f32 %v2788_v42, %v1547_v13 }
0x15d3   :  { %v1623_v63 = vsel %vm403_vm5, %v1549_v16, 0.0  ;;  %vm423_vm5 = vcmask 519424  }
0x15d4   :  { %v1733_v37 = vpack.c.bf16 %v1623_v63, %v1623_v63  ;;  %v411_v3 = vpop.permute.xlu1 %410 }
0x15d5   :  { %414 = vst.msk [vmem:[#allocation9] sm:$0xf] %vm413_vm0, %v411_v3 }
0x15d6   :  { %1628 = vrot.lane.b32.xlu1 %v1733_v37, %s2168_s1 }
0x15d8   :  { %v591_v45 = vpop.permute.xlu1 %590 }
0x15d9   :  { %594 = vst.msk [vmem:[#allocation9 + $0x4] sm:$0xf] %vm413_vm0, %v591_v45 }
0x15dc   :  { %v775_v7 = vpop.permute.xlu1 %774 }
0x15dd   :  { %778 = vst.msk [vmem:[#allocation9 + $0x8] sm:$0xf] %vm413_vm0, %v775_v7 }
0x15e0   :  { %v959_v50 = vpop.permute.xlu1 %958 }
0x15e1   :  { %962 = vst.msk [vmem:[#allocation9 + $0xc] sm:$0xf] %vm413_vm0, %v959_v50 }
0x15e4   :  { %v1129_v61 = vpop.permute.xlu1 %1128 }
0x15e8   :  { %v1297_v34 = vpop.permute.xlu1 %1296 }
0x15e9   :  { %v1620_v2 = vpop.permute.xlu0 %1619 }
0x15ea   :  { %v1622_v39 = vmul.f32 %v2792_v10, %v1620_v2 }
0x15ec   :  { %v1632_v8 = vsel %vm316_vm4, %v1622_v39, 0.0  ;;  %v1465_v54 = vpop.permute.xlu1 %1464 }
0x15ed   :  { %v420_v40 = vpop.permute.xlu0 %419  ;;  %v1734_v0 = vpack.c.bf16 %v1632_v8, %v1632_v8 }
0x15ee   :  { %424 = vst.msk [vmem:[#allocation9 + $0x1c] sm:$0xf] %vm423_vm5, %v420_v40 }
0x15ef   :  { %1637 = vrot.lane.b32.xlu0 %v1734_v0, %s2162_s9 }
0x15f1   :  { %v601_v29 = vpop.permute.xlu0 %600 }
0x15f2   :  { %604 = vst.msk [vmem:[#allocation9 + $0x18] sm:$0xf] %vm423_vm5, %v601_v29 }
0x15f3   :  { %1467 = vst.msk [vmem:[#allocation9 + $0x18] sm:$0xf] %vm413_vm0, %v1465_v54 }
0x15f5   :  { %v785_v35 = vpop.permute.xlu0 %784 }
0x15f6   :  { %788 = vst.msk [vmem:[#allocation9 + $0x14] sm:$0xf] %vm423_vm5, %v785_v35 }
0x15f7   :  { %1299 = vst.msk [vmem:[#allocation9 + $0x14] sm:$0xf] %vm413_vm0, %v1297_v34 }
0x15f9   :  { %v969_v58 = vpop.permute.xlu0 %968 }
0x15fa   :  { %972 = vst.msk [vmem:[#allocation9 + $0x10] sm:$0xf] %vm423_vm5, %v969_v58 }
0x15fb   :  { %1131 = vst.msk [vmem:[#allocation9 + $0x10] sm:$0xf] %vm413_vm0, %v1129_v61 }
0x15fd   :  { %v1138_v31 = vpop.permute.xlu0 %1137 }
0x15fe   :  { %1140 = vst.msk [vmem:[#allocation9 + $0xc] sm:$0xf] %vm423_vm5, %v1138_v31 }
0x1601   :  { %v1306_v59 = vpop.permute.xlu0 %1305 }
0x1602   :  { %1308 = vst.msk [vmem:[#allocation9 + $0x8] sm:$0xf] %vm423_vm5, %v1306_v59 }
0x1605   :  { %v1474_v62 = vpop.permute.xlu0 %1473 }
0x1606   :  { %1476 = vst.msk [vmem:[#allocation9 + $0x4] sm:$0xf] %vm423_vm5, %v1474_v62 }
0x1648   :  { %v1629_v42 = vpop.permute.xlu1 %1628 }
0x1649   :  { %1631 = vst.msk [vmem:[#allocation9 + $0x1c] sm:$0xf] %vm413_vm0, %v1629_v42 }
0x1661   :  { %v1638_v14 = vpop.permute.xlu0 %1637 }
0x1662   :  { %1640 = vst.msk [vmem:[#allocation9] sm:$0xf] %vm423_vm5, %v1638_v14 }
0x1663   :  { %2143 = shalt.err (!%p2140_p0)
}
0x1664   :  { %s2144_s3 = scalar_lea.hbm %s2904_s6, 512 }
0x1665   :  { %p2145_p1 = scmp.ne.s32.totalorder %s2904_s6, %s2144_s3  ;;  %p2148_p2 = scmp.lt.u32.totalorder %s2144_s3, %s2904_s6 }
0x1667   :  { %p2150_p3 = pnand %p2148_p2, %p2145_p1 }
0x1669   :  { %2153 = shalt.err (!%p2150_p3)
}
0x166a   :  { %1652 = dma.vmem_to_hbm [thread:$0]  %s1647_s17, 512, %s2904_s6, [#allocation5], %s2162_s9, %s2162_s9, %s2163_s10  }
0x166b   :  { %2158 = dma.done.wait [#allocation5], 512  }
0x166c   :  { %2159 = vsyncadd [#allocation5], 4294966784 }
0x166d   :  { %1656 = vsyncpa [#allocation4], 1 }
0x166e   :  { %1657 = vsyncpa [#allocation7], 1 }
0x166f   :  { %1658 = vsyncpa [#allocation5], 1 }

</bundles_post_ra>
